<compile_context>
chip_gen: v6e
topology: v6e:2x2x1
jax: 0.10.0
libtpu: 0.0.40
codegen_flags: <defaults>
</compile_context>

<pallas_src>
import functools

import jax
import jax.numpy as jnp
from jax.experimental import pallas as pl
from jax.experimental.pallas import tpu as pltpu

LANE = 128  # TPU lane width (last-dim vreg axis)


def _round_up(x: int, m: int) -> int:
    return ((x + m - 1) // m) * m


def _pad_to(a, shape):
    widths = [(0, t - s) for s, t in zip(a.shape, shape)]
    if all(w == (0, 0) for w in widths):
        return a
    return jnp.pad(a, widths)


def _detr_heads_kernel(*refs, nt_p, na_p, h_p, num_tail, compute_dtype):
    """One (tile_m, Kp) row tile -> all three head outputs.

    refs = (x, w1, b1, w_s1, b_s1, ..., out_target, out_aspect, out_sentiment)
    w1/b1 hold the column-concatenated first layers of [target, aspect,
    sentiment[0]].  Matmuls run on the MXU in `compute_dtype` with f32
    accumulation; bias add + tanh epilogues stay f32 (VPU/EUP).
    """
    x_ref, w1_ref, b1_ref = refs[0], refs[1], refs[2]
    tail_refs = refs[3:3 + 2 * num_tail]
    ot_ref, oa_ref, os_ref = refs[3 + 2 * num_tail:]

    # Shared first-layer matmul for all three heads.
    y = jnp.dot(x_ref[...], w1_ref[...], preferred_element_type=jnp.float32)
    y = y + b1_ref[...]                        # (1, N1) f32 bias broadcast

    # Linear heads: lane-aligned slices, lane-dense stores.
    ot_ref[...] = y[:, :nt_p].astype(ot_ref.dtype)
    oa_ref[...] = y[:, nt_p:nt_p + na_p].astype(oa_ref.dtype)

    # Sentiment MLP: remaining layers back-to-back, intermediates never leave
    # vregs/VMEM.  tanh between layers, final layer linear.
    slab = y[:, nt_p + na_p:nt_p + na_p + h_p]
    if num_tail == 0:
        os_ref[...] = slab.astype(os_ref.dtype)
        return
    h = jnp.tanh(slab)
    for i in range(num_tail):
        w_ref = tail_refs[2 * i]
        b_ref = tail_refs[2 * i + 1]
        z = jnp.dot(h.astype(compute_dtype), w_ref[...],
                    preferred_element_type=jnp.float32) + b_ref[...]
        h = jnp.tanh(z) if i < num_tail - 1 else z
    os_ref[...] = h.astype(os_ref.dtype)


def make_detr_heads_forward(params, *, compute_dtype=jnp.bfloat16, tile_m=128):
    """Pad/cast head weights ONCE and return a jitted forward(hs) -> dict.

    params:
      "target_embed":    [(W, b)]                          W: (d, num_target+1)
      "aspect_embed":    [(W, b)]                          W: (d, num_aspect+1)
      "sentiment_embed": [(W0, b0), ..., (W_{L-1}, b_{L-1})]  (tanh between)
    W stored (in_features, out_features); b (1, out_features).
    Zero padding is semantics-preserving (tanh(0)==0, padded weight rows/cols
    and biases are zero), and padded lanes are sliced off in the wrapper.
    """
    (wt, bt), = params["target_embed"]
    (wa, ba), = params["aspect_embed"]
    sent = params["sentiment_embed"]

    d = wt.shape[0]
    kp = _round_up(d, LANE)
    nt, na = int(wt.shape[1]), int(wa.shape[1])
    nt_p, na_p = _round_up(nt, LANE), _round_up(na, LANE)

    ws0, bs0 = sent[0]
    h_p = _round_up(int(ws0.shape[1]), LANE)

    # ---- hoisted weight prep (runs once, not per forward) -------------------
    w1 = jnp.concatenate(
        [_pad_to(wt, (kp, nt_p)), _pad_to(wa, (kp, na_p)),
         _pad_to(ws0, (kp, h_p))], axis=1).astype(compute_dtype)
    b1 = jnp.concatenate(
        [_pad_to(bt.reshape(1, -1), (1, nt_p)),
         _pad_to(ba.reshape(1, -1), (1, na_p)),
         _pad_to(bs0.reshape(1, -1), (1, h_p))], axis=1).astype(jnp.float32)

    tail = []
    in_p = h_p
    for (w, b) in sent[1:]:
        out_p = _round_up(int(w.shape[1]), LANE)
        tail.append((_pad_to(w, (in_p, out_p)).astype(compute_dtype),
                     _pad_to(b.reshape(1, -1), (1, out_p)).astype(jnp.float32)))
        in_p = out_p
    num_tail = len(tail)
    ns = int(sent[-1][0].shape[1])
    ns_p = _round_up(ns, LANE) if num_tail else h_p

    flat_tail = [a for wb in tail for a in wb]
    n1 = nt_p + na_p + h_p
    x_bytes = jnp.dtype(compute_dtype).itemsize
    const_bytes = int(w1.nbytes + b1.nbytes + sum(a.nbytes for a in flat_tail))

    kernel = functools.partial(
        _detr_heads_kernel, nt_p=nt_p, na_p=na_p, h_p=h_p,
        num_tail=num_tail, compute_dtype=compute_dtype)

    @jax.jit
    def forward(hs):
        b, q, dm = hs.shape
        assert dm == d, "hs feature dim must match head input dim"
        M = b * q
        x = hs.reshape(M, dm)
        if dm != kp:
            x = jnp.pad(x, ((0, 0), (0, kp - dm)))
        x = x.astype(compute_dtype)

        grid_m = pl.cdiv(M, tile_m)

        flops = 2 * M * kp * n1 + sum(
            2 * M * w.shape[0] * w.shape[1] for (w, _) in tail)
        transcendentals = num_tail * M * h_p
        bytes_accessed = (M * kp * x_bytes + const_bytes
                          + M * (nt_p + na_p + ns_p) * 4)

        in_specs = [pl.BlockSpec((tile_m, kp), lambda i: (i, 0)),
                    pl.BlockSpec(w1.shape, lambda i: (0, 0)),   # VMEM-resident
                    pl.BlockSpec(b1.shape, lambda i: (0, 0))]
        for a in flat_tail:
            in_specs.append(pl.BlockSpec(a.shape, lambda i: (0, 0)))

        out_t, out_a, out_s = pl.pallas_call(
            kernel,
            out_shape=(jax.ShapeDtypeStruct((M, nt_p), jnp.float32),
                       jax.ShapeDtypeStruct((M, na_p), jnp.float32),
                       jax.ShapeDtypeStruct((M, ns_p), jnp.float32)),
            grid_spec=pltpu.PrefetchScalarGridSpec(
                num_scalar_prefetch=0,
                grid=(grid_m,),
                in_specs=in_specs,
                out_specs=[pl.BlockSpec((tile_m, nt_p), lambda i: (i, 0)),
                           pl.BlockSpec((tile_m, na_p), lambda i: (i, 0)),
                           pl.BlockSpec((tile_m, ns_p), lambda i: (i, 0))]),
            compiler_params=pltpu.CompilerParams(
                dimension_semantics=("parallel",)),
            cost_estimate=pl.CostEstimate(
                flops=int(flops), transcendentals=int(transcendentals),
                bytes_accessed=int(bytes_accessed)),
        )(x, w1, b1, *flat_tail)

        return {
            "pred_target": out_t[:, :nt].reshape(b, q, nt),
            "pred_aspect": out_a[:, :na].reshape(b, q, na),
            "pred_sentiment": out_s[:, :ns].reshape(b, q, ns),
        }

    return forward


# ----------------------------- reference path ------------------------------

def mlp_ref(x, layers, compute_dtype=jnp.float32):
    h = x
    for i, (w, b) in enumerate(layers):
        y = jnp.dot(h.astype(compute_dtype), w.astype(compute_dtype),
                    preferred_element_type=jnp.float32) + b.reshape(1, -1)
        h = jnp.tanh(y) if i < len(layers) - 1 else y
    return h


def detr_heads_ref(hs, params, compute_dtype=jnp.float32):
    b, q, d = hs.shape
    rows = hs.reshape(b * q, d)
    return {
        "pred_target": mlp_ref(rows, params["target_embed"],
                               compute_dtype).reshape(b, q, -1),
        "pred_aspect": mlp_ref(rows, params["aspect_embed"],
                               compute_dtype).reshape(b, q, -1),
        "pred_sentiment": mlp_ref(rows, params["sentiment_embed"],
                                  compute_dtype).reshape(b, q, -1),
    }


# ------------------------------- param init --------------------------------

def init_linear(key, n_in, n_out):
    """nn.Linear-style init; weight stored as (in, out), bias as (1, out)."""
    kw, kb = jax.random.split(key)
    bound = 1.0 / jnp.sqrt(jnp.float32(n_in))
    w = jax.random.uniform(kw, (n_in, n_out), jnp.float32, -bound, bound)
    b = jax.random.uniform(kb, (1, n_out), jnp.float32, -bound, bound)
    return w, b


def init_mlp(key, input_dim, hidden_dim, output_dim, num_layers):
    h = [hidden_dim] * (num_layers - 1)
    dims_in = [input_dim] + h
    dims_out = h + [output_dim]
    keys = jax.random.split(key, num_layers)
    return [init_linear(k, n, m) for k, n, m in zip(keys, dims_in, dims_out)]


if __name__ == "__main__":
    key = jax.random.PRNGKey(0)
    k_hs, k_t, k_a, k_s = jax.random.split(key, 4)

    # Small DETR-head shapes: d_model=128 (lane-aligned), 100 object queries.
    # M = 2*100 = 200 rows -> grid = cdiv(200,128) = 2 row tiles (ragged last
    # tile, no M padding), so dual-TC v7x gets one tile per core.
    batch, num_queries, hidden_dim = 2, 100, 128
    num_aspect, num_target = 5, 226

    hs = jax.random.normal(k_hs, (batch, num_queries, hidden_dim), jnp.float32)
    params = {
        "target_embed": [init_linear(k_t, hidden_dim, num_target + 1)],
        "aspect_embed": [init_linear(k_a, hidden_dim, num_aspect + 1)],
        "sentiment_embed": init_mlp(k_s, hidden_dim, hidden_dim, 1, 3),
    }

    # bf16 MXU operands / f32 accumulation + epilogue: fast path on every
    # TPU generation (v5e/v6e/v7x MXUs are bf16-native).
    fwd_bf16 = make_detr_heads_forward(params, compute_dtype=jnp.bfloat16)
    out_bf16 = jax.block_until_ready(fwd_bf16(hs))
    ref_bf16 = detr_heads_ref(hs, params, jnp.bfloat16)

    assert out_bf16["pred_target"].shape == (batch, num_queries, num_target + 1)
    assert out_bf16["pred_aspect"].shape == (batch, num_queries, num_aspect + 1)
    assert out_bf16["pred_sentiment"].shape == (batch, num_queries, 1)
    for name in ("pred_target", "pred_aspect", "pred_sentiment"):
        assert jnp.allclose(out_bf16[name], ref_bf16[name],
                            atol=1e-2, rtol=1e-2), name

    # Full f32 path: tight check against the JAX reference.
    fwd_f32 = make_detr_heads_forward(params, compute_dtype=jnp.float32)
    out_f32 = jax.block_until_ready(fwd_f32(hs))
    ref_f32 = detr_heads_ref(hs, params, jnp.float32)
    for name in ("pred_target", "pred_aspect", "pred_sentiment"):
        assert jnp.allclose(out_f32[name], ref_f32[name],
                            atol=1e-4, rtol=1e-4), name

    print("KERNEL_OK")
</pallas_src>

<mosaic_0001>
module attributes {stable_mosaic.version = 11 : i64} {
  func.func @_detr_heads_kernel(%arg0: i32, %arg1: memref<128x128xbf16, #tpu.memory_space<vmem>>, %arg2: memref<128x512xbf16, #tpu.memory_space<vmem>>, %arg3: memref<1x512xf32, #tpu.memory_space<vmem>>, %arg4: memref<128x128xbf16, #tpu.memory_space<vmem>>, %arg5: memref<1x128xf32, #tpu.memory_space<vmem>>, %arg6: memref<128x128xbf16, #tpu.memory_space<vmem>>, %arg7: memref<1x128xf32, #tpu.memory_space<vmem>>, %arg8: memref<128x256xf32, #tpu.memory_space<vmem>>, %arg9: memref<128x128xf32, #tpu.memory_space<vmem>>, %arg10: memref<128x128xf32, #tpu.memory_space<vmem>>) attributes {dimension_semantics = [#tpu.dimension_semantics<parallel>], iteration_bounds = array<i64: 2>, scalar_prefetch = 0 : i64, scratch_operands = 0 : i64, tpu.core_type = #tpu.core_type<tc>, window_params = [{transform_indices = @transform_0, window_bounds = array<i64: 128, 128>}, {pipeline_mode = #tpu.pipeline_mode<synchronous>, transform_indices = @transform_1, window_bounds = array<i64: 128, 512>}, {pipeline_mode = #tpu.pipeline_mode<synchronous>, transform_indices = @transform_2, window_bounds = array<i64: 1, 512>}, {pipeline_mode = #tpu.pipeline_mode<synchronous>, transform_indices = @transform_3, window_bounds = array<i64: 128, 128>}, {pipeline_mode = #tpu.pipeline_mode<synchronous>, transform_indices = @transform_4, window_bounds = array<i64: 1, 128>}, {pipeline_mode = #tpu.pipeline_mode<synchronous>, transform_indices = @transform_5, window_bounds = array<i64: 128, 128>}, {pipeline_mode = #tpu.pipeline_mode<synchronous>, transform_indices = @transform_6, window_bounds = array<i64: 1, 128>}, {transform_indices = @transform_7, window_bounds = array<i64: 128, 256>}, {transform_indices = @transform_8, window_bounds = array<i64: 128, 128>}, {transform_indices = @transform_9, window_bounds = array<i64: 128, 128>}]} {
    %c0 = arith.constant 0 : index
    %c0_0 = arith.constant 0 : index
    %0 = vector.load %arg1[%c0, %c0_0] : memref<128x128xbf16, #tpu.memory_space<vmem>>, vector<128x128xbf16>
    %c0_1 = arith.constant 0 : index
    %c0_2 = arith.constant 0 : index
    %1 = vector.load %arg2[%c0_1, %c0_2] : memref<128x512xbf16, #tpu.memory_space<vmem>>, vector<128x512xbf16>
    %cst = arith.constant dense<0.000000e+00> : vector<128x512xf32>
    %2 = tpu.matmul %0, %1, %cst {dimension_numbers = #tpu.dot_dimension_numbers<[1], [0], [0], [1], [0, 0, 1, 1], [], []>} : vector<128x128xbf16>, vector<128x512xbf16>, vector<128x512xf32> -> vector<128x512xf32>
    %c0_3 = arith.constant 0 : index
    %c0_4 = arith.constant 0 : index
    %3 = vector.load %arg3[%c0_3, %c0_4] : memref<1x512xf32, #tpu.memory_space<vmem>>, vector<1x512xf32>
    %4 = vector.broadcast %3 : vector<1x512xf32> to vector<128x512xf32>
    %5 = arith.addf %2, %4 : vector<128x512xf32>
    %6 = vector.extract_strided_slice %5 {offsets = [0, 0], sizes = [128, 256], strides = [1, 1]} : vector<128x512xf32> to vector<128x256xf32>
    %c0_5 = arith.constant 0 : index
    %c0_6 = arith.constant 0 : index
    %7 = vector.load %arg8[%c0_5, %c0_6] : memref<128x256xf32, #tpu.memory_space<vmem>>, vector<128x256xf32>
    tpu.vector_store %arg8[%c0_5, %c0_6], %6 {strides = array<i32>} : memref<128x256xf32, #tpu.memory_space<vmem>>, vector<128x256xf32>,
    %8 = vector.extract_strided_slice %5 {offsets = [0, 256], sizes = [128, 128], strides = [1, 1]} : vector<128x512xf32> to vector<128x128xf32>
    %c0_7 = arith.constant 0 : index
    %c0_8 = arith.constant 0 : index
    %9 = vector.load %arg9[%c0_7, %c0_8] : memref<128x128xf32, #tpu.memory_space<vmem>>, vector<128x128xf32>
    tpu.vector_store %arg9[%c0_7, %c0_8], %8 {strides = array<i32>} : memref<128x128xf32, #tpu.memory_space<vmem>>, vector<128x128xf32>,
    %10 = vector.extract_strided_slice %5 {offsets = [0, 384], sizes = [128, 128], strides = [1, 1]} : vector<128x512xf32> to vector<128x128xf32>
    %11 = math.tanh %10 : vector<128x128xf32>
    %12 = arith.truncf %11 : vector<128x128xf32> to vector<128x128xbf16>
    %c0_9 = arith.constant 0 : index
    %c0_10 = arith.constant 0 : index
    %13 = vector.load %arg4[%c0_9, %c0_10] : memref<128x128xbf16, #tpu.memory_space<vmem>>, vector<128x128xbf16>
    %cst_11 = arith.constant dense<0.000000e+00> : vector<128x128xf32>
    %14 = tpu.matmul %12, %13, %cst_11 {dimension_numbers = #tpu.dot_dimension_numbers<[1], [0], [0], [1], [0, 0, 1, 1], [], []>} : vector<128x128xbf16>, vector<128x128xbf16>, vector<128x128xf32> -> vector<128x128xf32>
    %c0_12 = arith.constant 0 : index
    %c0_13 = arith.constant 0 : index
    %15 = vector.load %arg5[%c0_12, %c0_13] : memref<1x128xf32, #tpu.memory_space<vmem>>, vector<1x128xf32>
    %16 = vector.broadcast %15 : vector<1x128xf32> to vector<128x128xf32>
    %17 = arith.addf %14, %16 : vector<128x128xf32>
    %18 = math.tanh %17 : vector<128x128xf32>
    %19 = arith.truncf %18 : vector<128x128xf32> to vector<128x128xbf16>
    %c0_14 = arith.constant 0 : index
    %c0_15 = arith.constant 0 : index
    %20 = vector.load %arg6[%c0_14, %c0_15] : memref<128x128xbf16, #tpu.memory_space<vmem>>, vector<128x128xbf16>
    %cst_16 = arith.constant dense<0.000000e+00> : vector<128x128xf32>
    %21 = tpu.matmul %19, %20, %cst_16 {dimension_numbers = #tpu.dot_dimension_numbers<[1], [0], [0], [1], [0, 0, 1, 1], [], []>} : vector<128x128xbf16>, vector<128x128xbf16>, vector<128x128xf32> -> vector<128x128xf32>
    %c0_17 = arith.constant 0 : index
    %c0_18 = arith.constant 0 : index
    %22 = vector.load %arg7[%c0_17, %c0_18] : memref<1x128xf32, #tpu.memory_space<vmem>>, vector<1x128xf32>
    %23 = vector.broadcast %22 : vector<1x128xf32> to vector<128x128xf32>
    %24 = arith.addf %21, %23 : vector<128x128xf32>
    %c0_19 = arith.constant 0 : index
    %c0_20 = arith.constant 0 : index
    %25 = vector.load %arg10[%c0_19, %c0_20] : memref<128x128xf32, #tpu.memory_space<vmem>>, vector<128x128xf32>
    tpu.vector_store %arg10[%c0_19, %c0_20], %24 {strides = array<i32>} : memref<128x128xf32, #tpu.memory_space<vmem>>, vector<128x128xf32>,
    return
  }
  func.func @transform_0(%arg0: i32) -> (i32, i32) {
    %c0_i32 = arith.constant 0 : i32
    %c0_i32_0 = arith.constant 0 : i32
    return %arg0, %c0_i32 : i32, i32
  }
  func.func @transform_1(%arg0: i32) -> (i32, i32) {
    %c0_i32 = arith.constant 0 : i32
    %c0_i32_0 = arith.constant 0 : i32
    %c0_i32_1 = arith.constant 0 : i32
    return %c0_i32, %c0_i32_0 : i32, i32
  }
  func.func @transform_2(%arg0: i32) -> (i32, i32) {
    %c0_i32 = arith.constant 0 : i32
    %c0_i32_0 = arith.constant 0 : i32
    %c0_i32_1 = arith.constant 0 : i32
    return %c0_i32, %c0_i32_0 : i32, i32
  }
  func.func @transform_3(%arg0: i32) -> (i32, i32) {
    %c0_i32 = arith.constant 0 : i32
    %c0_i32_0 = arith.constant 0 : i32
    %c0_i32_1 = arith.constant 0 : i32
    return %c0_i32, %c0_i32_0 : i32, i32
  }
  func.func @transform_4(%arg0: i32) -> (i32, i32) {
    %c0_i32 = arith.constant 0 : i32
    %c0_i32_0 = arith.constant 0 : i32
    %c0_i32_1 = arith.constant 0 : i32
    return %c0_i32, %c0_i32_0 : i32, i32
  }
  func.func @transform_5(%arg0: i32) -> (i32, i32) {
    %c0_i32 = arith.constant 0 : i32
    %c0_i32_0 = arith.constant 0 : i32
    %c0_i32_1 = arith.constant 0 : i32
    return %c0_i32, %c0_i32_0 : i32, i32
  }
  func.func @transform_6(%arg0: i32) -> (i32, i32) {
    %c0_i32 = arith.constant 0 : i32
    %c0_i32_0 = arith.constant 0 : i32
    %c0_i32_1 = arith.constant 0 : i32
    return %c0_i32, %c0_i32_0 : i32, i32
  }
  func.func @transform_7(%arg0: i32) -> (i32, i32) {
    %c0_i32 = arith.constant 0 : i32
    %c0_i32_0 = arith.constant 0 : i32
    return %arg0, %c0_i32 : i32, i32
  }
  func.func @transform_8(%arg0: i32) -> (i32, i32) {
    %c0_i32 = arith.constant 0 : i32
    %c0_i32_0 = arith.constant 0 : i32
    return %arg0, %c0_i32 : i32, i32
  }
  func.func @transform_9(%arg0: i32) -> (i32, i32) {
    %c0_i32 = arith.constant 0 : i32
    %c0_i32_0 = arith.constant 0 : i32
    return %arg0, %c0_i32 : i32, i32
  }
}

</mosaic_0001>

<bundles_post_ra>
// kernel: forward.1
= control target key start
LH: loop header
LB: loop body
LE: loop exit
PB: predicated region body
PF: predicated region fallthrough
CT: control target
= control target key end

     0   :  { %s3608_s0 = inlined_call_operand.vmem [shape: bf16[200,128], index: 0, kind: input, shape index: {}]   ;;  %s3609_s1 = inlined_call_operand.vmem [shape: bf16[128,512], index: 1, kind: input, shape index: {}]   ;;  %s3610_s2 = inlined_call_operand.vmem [shape: f32[1,512], index: 2, kind: input, shape index: {}]   ;;  %s3611_s3 = inlined_call_operand.vmem [shape: bf16[128,128], index: 3, kind: input, shape index: {}]   ;;  %s3612_s4 = inlined_call_operand.vmem [shape: f32[1,128], index: 4, kind: input, shape index: {}]   ;;  %s3613_s5 = inlined_call_operand.vmem [shape: bf16[128,128], index: 5, kind: input, shape index: {}]   ;;  %s3614_s6 = inlined_call_operand.vmem [shape: f32[1,128], index: 6, kind: input, shape index: {}]   ;;  %s3615_s7 = inlined_call_operand.vmem [shape: f32[200,256], index: 7, kind: output, shape index: {0}]   ;;  %s3616_s8 = inlined_call_operand.vmem [shape: f32[200,128], index: 8, kind: output, shape index: {1}]   ;;  %s3617_s9 = inlined_call_operand.vmem [shape: f32[200,128], index: 9, kind: output, shape index: {2}]  }
   0x1   :  { %3618 = sst [smem:[#allocation5_spill]] %s3608_s0 }
   0x2   :  { %3619 = sst [smem:[#allocation6_spill]] %s3609_s1 }
   0x3   :  { %s2900_s30 = smov 0   ;;  %s2902_s10 = smov 0  }
   0x4   :  { %s2904_s11 = smov 0  }
   0x5 LB: > { %s2913_s12 = sadd.s32 4294967295, %s2751_s11   ;;  %s2915_s13 = sadd.s32 1, %s2751_s11   ;;  %s2751_s11 = sphi %s2904_s11, %s3636_s11   ;;  %s2747_s10 = sphi %s2902_s10, %s3635_s10   ;;  %s2743_s30 = sphi %s2900_s30, %s3634_s30  }
   0x6   : > { %s176_s14 = ssub.s32 %s2751_s11, %s2915_s13  ;;  %s179_s15 = sadd.s32 1, %s2747_s10 }
   0x7   : > { %p177_p0 = scmp.eq.s32.totalorder %s176_s14, 0  ;;  %p189_p1 = scmp.ne.s32.totalorder %s2747_s10, %s2743_s30 }
   0x8   : > { %p190_p2 = scmp.eq.s32.totalorder %s2913_s12, 1  ;;  %p2060_p3 = scmp.ge.s32.totalorder %s2751_s11, 1 }
   0x9   : > { %s2923_s16 = scalar_select %p177_p0, %s2747_s10, %s179_s15  }
   0xa   : > { %p2925_p4 = por %p190_p2, %p189_p1  ;;  %p301_p5 = scmp.lt.s32.totalorder %s2751_s11, 3 }
   0xc   : > { %p302_p6 = pnand %p2060_p3, %p301_p5 }
   0xd   : > { %s3621_s1 = sld [smem:[#allocation6_spill]] (!%p302_p6)  ;;  %s2933_s20 = sshll.u32 (!%p302_p6), %s2913_s12, 4 }
   0xe   : > { %305 = sbr.rel (%p302_p6) target bundleno = 886 (0x376), region = 48  ;;  %p353_p7 = scmp.lt.s32.totalorder (!%p302_p6), %s2933_s20, 24 }
   0xf   : > { %s3622_s0 = sld [smem:[#allocation5_spill]] (!%p302_p6) }
  0x13   : > { %v2497_v0 = vld [vmem:[%s3621_s1 + $0xec] ss:$16 sps:$4 sm:$0xff]   ;;  %v2499_v1 = vld [vmem:[%s3621_s1 + $0xe8] ss:$16 sps:$4 sm:$0xff]   ;;  %v2849_v2 = vmov 0   ;;  %s354_s27 = scalar_select %p353_p7, %s2933_s20, 24  ;;  %v429_v51 = vlaneseq }
  0x14   : > { %802 = vmatprep.mubr.bf16.mxu1 %v2849_v2  ;;  %689 = vmatprep.mubr.bf16.mxu0 %v2849_v2  ;;  %v2500_v3 = vld [vmem:[%s3621_s1 + $0xcc] ss:$16 sps:$4 sm:$0xff]   ;;  %v2502_v4 = vld [vmem:[%s3621_s1 + $0xc8] ss:$16 sps:$4 sm:$0xff]   ;;  %v2529_v14 = vld [vmem:[%s3621_s1 + $0xe4] ss:$16 sps:$4 sm:$0xff]  }
  0x15   : > { %770 = vmatprep.subr.bf16.mxu1 %v2497_v0  ;;  %v2503_v5 = vld [vmem:[%s3621_s1 + $0xac] ss:$16 sps:$4 sm:$0xff]   ;;  %s2065_s11 = sshll.u32 %s354_s27, 2  ;;  %v2505_v6 = vld [vmem:[%s3621_s1 + $0xa8] ss:$16 sps:$4 sm:$0xff]   ;;  %657 = vmatprep.subr.bf16.mxu0 %v2529_v14  ;;  %v2554_v42 = vld [vmem:[%s3611_s3 + $0x30] sm:$0xff]  }
  0x16   : > { %771 = vmatpush1.bf16.msra.mxu1 %v2499_v1  ;;  %v2506_v7 = vld [vmem:[%s3621_s1 + $0x8c] ss:$16 sps:$4 sm:$0xff]   ;;  %s2960_s23 = scalar_lea.vmem %s3622_s0, %s2065_s11  ;;  %v2508_v8 = vld [vmem:[%s3621_s1 + $0x88] ss:$16 sps:$4 sm:$0xff]   ;;  %v2531_v15 = vld [vmem:[%s3621_s1 + $0xe0] ss:$16 sps:$4 sm:$0xff]  }
  0x17   : > { %772 = vmatprep.subr.bf16.mxu1 %v2500_v3  ;;  %v2509_v9 = vld [vmem:[%s3621_s1 + $0x6c] ss:$16 sps:$4 sm:$0xff]   ;;  %v2511_v10 = vld [vmem:[%s3621_s1 + $0x68] ss:$16 sps:$4 sm:$0xff]   ;;  %v2532_v16 = vld [vmem:[%s3621_s1 + $0xc4] ss:$16 sps:$4 sm:$0xff]   ;;  %658 = vmatpush1.bf16.msra.mxu0 %v2531_v15 }
  0x18   : > { %v2512_v11 = vld [vmem:[%s3621_s1 + $0x4c] ss:$16 sps:$4 sm:$0xff]   ;;  %v2514_v12 = vld [vmem:[%s3621_s1 + $0x48] ss:$16 sps:$4 sm:$0xff]   ;;  %v2534_v17 = vld [vmem:[%s3621_s1 + $0xc0] ss:$16 sps:$4 sm:$0xff]   ;;  %659 = vmatprep.subr.bf16.mxu0 %v2532_v16 }
  0x19   : > { %v2515_v13 = vld [vmem:[%s3621_s1 + $0x2c] ss:$16 sps:$4 sm:$0xff]   ;;  %v2517_v18 = vld [vmem:[%s3621_s1 + $0x28] ss:$16 sps:$4 sm:$0xff]   ;;  %v2535_v19 = vld [vmem:[%s3621_s1 + $0xa4] ss:$16 sps:$4 sm:$0xff]  }
  0x1a   : > { %773 = vmatpush1.bf16.msra.mxu1 %v2502_v4  ;;  %v2518_v20 = vld [vmem:[%s3621_s1 + $0xc] ss:$16 sps:$4 sm:$0xff]   ;;  %v2537_v21 = vld [vmem:[%s3621_s1 + $0xa0] ss:$16 sps:$4 sm:$0xff]   ;;  %v2520_v22 = vld [vmem:[%s3621_s1 + $0x8] ss:$16 sps:$4 sm:$0xff]  }
  0x1b   : > { %774 = vmatprep.subr.bf16.mxu1 %v2503_v5  ;;  %660 = vmatpush1.bf16.msra.mxu0 %v2534_v17  ;;  %v2538_v23 = vld [vmem:[%s3621_s1 + $0x84] ss:$16 sps:$4 sm:$0xff]   ;;  %v2540_v25 = vld [vmem:[%s3621_s1 + $0x80] ss:$16 sps:$4 sm:$0xff]   ;;  %v2522_v29 = vld [vmem:[%s2960_s23 + $0x8] sm:$0xff]   ;;  %v430_v52 = vshrl.u32 %v429_v51, 7 }
  0x1c   : > { %661 = vmatprep.subr.bf16.mxu0 %v2535_v19  ;;  %v2521_v24 = vld [vmem:[%s2960_s23] sm:$0xff]   ;;  %v2523_v34 = vld [vmem:[%s2960_s23 + $0x10] sm:$0xff]   ;;  %v2553_v36 = vld [vmem:[%s3611_s3 + $0x38] sm:$0xff]   ;;  %s2175_s25 = sshll.u32 (%p2925_p4), %s2913_s12, 8 }
  0x1d   : > { %v2541_v26 = vld [vmem:[%s3621_s1 + $0x64] ss:$16 sps:$4 sm:$0xff]   ;;  %v2543_v27 = vld [vmem:[%s3621_s1 + $0x60] ss:$16 sps:$4 sm:$0xff]   ;;  %v2524_v37 = vld [vmem:[%s2960_s23 + $0x18] sm:$0xff]   ;;  %v439_v53 = vsub.s32 2, %v430_v52 }
  0x1e   : > { %775 = vmatpush1.bf16.msra.mxu1 %v2505_v6  ;;  %v2544_v28 = vld [vmem:[%s3621_s1 + $0x44] ss:$16 sps:$4 sm:$0xff]   ;;  %v2546_v30 = vld [vmem:[%s3621_s1 + $0x40] ss:$16 sps:$4 sm:$0xff]   ;;  %v2526_v39 = vld [vmem:[%s2960_s23 + $0x28] sm:$0xff]   ;;  %v443_v55 = vsub.s32 3, %v430_v52 }
  0x1f   : > { %776 = vmatprep.subr.bf16.mxu1 %v2506_v7  ;;  %662 = vmatpush1.bf16.msra.mxu0 %v2537_v21  ;;  %v2547_v31 = vld [vmem:[%s3621_s1 + $0x24] ss:$16 sps:$4 sm:$0xff]   ;;  %v2549_v32 = vld [vmem:[%s3621_s1 + $0x20] ss:$16 sps:$4 sm:$0xff]   ;;  %v2528_v41 = vld [vmem:[%s2960_s23 + $0x38] sm:$0xff]   ;;  %v431_v7 = vsub.s32 0, %v430_v52 }
  0x20   : > { %663 = vmatprep.subr.bf16.mxu0 %v2538_v23  ;;  %v2550_v33 = vld [vmem:[%s3621_s1 + $0x4] ss:$16 sps:$4 sm:$0xff]   ;;  %v2552_v35 = vld [vmem:[%s3621_s1] ss:$16 sps:$4 sm:$0xff]   ;;  %v2555_v43 = vld [vmem:[%s3611_s3 + $0x28] sm:$0xff]  }
  0x21   : > { %v2525_v38 = vld [vmem:[%s2960_s23 + $0x20] sm:$0xff]   ;;  %v2527_v40 = vld [vmem:[%s2960_s23 + $0x30] sm:$0xff]   ;;  %v2557_v45 = vld [vmem:[%s3611_s3 + $0x18] sm:$0xff]   ;;  %s333_s23 = sand.u32 1, %s2743_s30  }
  0x22   : > { %777 = vmatpush1.bf16.msra.mxu1 %v2508_v8  ;;  %v2556_v44 = vld [vmem:[%s3611_s3 + $0x20] sm:$0xff]   ;;  %v2558_v46 = vld [vmem:[%s3611_s3 + $0x10] sm:$0xff]   ;;  %v2559_v47 = vld [vmem:[%s3611_s3 + $0x8] sm:$0xff]   ;;  %s3095_s14 = sshll.u32 %s333_s23, 7  ;;  %s2061_s11 = sshll.u32 %s333_s23, 8 }
  0x23   : > { %778 = vmatprep.subr.bf16.mxu1 %v2509_v9  ;;  %664 = vmatpush1.bf16.msra.mxu0 %v2540_v25  ;;  %v2560_v48 = vld [vmem:[%s3611_s3] sm:$0xff]   ;;  %v2561_v49 = vld [vmem:[%s3613_s5 + $0x38] sm:$0xff]   ;;  %v2562_v50 = vld [vmem:[%s3613_s5 + $0x30] sm:$0xff]   ;;  %s3103_s15 = scalar_lea.vmem [#allocation3], %s3095_s14   ;;  %s3127_s30 = scalar_lea.vmem [#allocation2], %s2061_s11  }
  0x24   : > { %665 = vmatprep.subr.bf16.mxu0 %v2541_v26  ;;  %v427_v54 = vld [vmem:[%s3610_s2] sm:$0xf]  ;;  %s3267_s24 = scalar_lea.vmem [#allocation4], %s3095_s14   ;;  %s1347_s14 = ssub.s32 (%p2925_p4), 25, %s2933_s20 }
  0x25   : > { %v3097_v56 = vrot.slane %v427_v54, %v439_v53  ;;  %v3099_v58 = vrot.slane %v427_v54, %v443_v55  ;;  %p1348_p8 = scmp.lt.s32.totalorder (%p2925_p4), %s1347_s14, 16  ;;  %s3292_s23 = scalar_lea.vmem (%p2925_p4), %s3615_s7, %s2175_s25  }
  0x26   : > { %779 = vmatpush1.bf16.msra.mxu1 %v2511_v10  ;;  %v435_v10 = vsub.s32 1, %v430_v52 }
  0x27   : > { %780 = vmatprep.subr.bf16.mxu1 %v2512_v11  ;;  %666 = vmatpush1.bf16.msra.mxu0 %v2543_v27 }
  0x28   : > { %667 = vmatprep.subr.bf16.mxu0 %v2544_v28  ;;  %v3121_v16 = vrot.slane %v427_v54, %v435_v10 }
  0x2a   : > { %781 = vmatpush1.bf16.msra.mxu1 %v2514_v12 }
  0x2b   : > { %782 = vmatprep.subr.bf16.mxu1 %v2515_v13  ;;  %668 = vmatpush1.bf16.msra.mxu0 %v2546_v30  ;;  %v3118_v13 = vrot.slane %v427_v54, %v431_v7 }
  0x2c   : > { %669 = vmatprep.subr.bf16.mxu0 %v2547_v31 }
  0x2e   : > { %783 = vmatpush1.bf16.msra.mxu1 %v2517_v18 }
  0x2f   : > { %784 = vmatprep.subr.bf16.mxu1 %v2518_v20  ;;  %670 = vmatpush1.bf16.msra.mxu0 %v2549_v32 }
  0x30   : > { %671 = vmatprep.subr.bf16.mxu0 %v2550_v33 }
  0x32   : > { %785 = vmatpush1.bf16.msra.mxu1 %v2520_v22 }
  0x33   : > { %672 = vmatpush1.bf16.msra.mxu0 %v2552_v35  ;;  %2248 = vmatprep.subr.bf16.mxu1 %v2561_v49 }
  0x34   : > { %2216 = vmatprep.subr.bf16.mxu0 %v2553_v36 }
  0x35   : > { %803 = vmatmul.mubr.bf16.vlgmr.msra.gmra.mxu1 %v2521_v24 }
  0x36   : > { %812 = vmatprep.mubr.bf16.mxu1 %v2849_v2  ;;  %690 = vmatmul.mubr.bf16.vlgmr.msra.gmra.mxu0 %v2521_v24 }
  0x37   : > { %699 = vmatprep.mubr.bf16.mxu0 %v2849_v2  ;;  %2217 = vmatpush3.bf16.msra.mxu0 %v2553_v36 }
  0x38   : > { %2218 = vmatprep.subr.bf16.mxu0 %v2554_v42  ;;  %2249 = vmatpush3.bf16.msra.mxu1 %v2561_v49 }
  0x39   : > { %2250 = vmatprep.subr.bf16.mxu1 %v2562_v50 }
  0x3b   : > { %2219 = vmatpush3.bf16.msra.mxu0 %v2554_v42 }
  0x3c   : > { %2220 = vmatprep.subr.bf16.mxu0 %v2555_v43  ;;  %2251 = vmatpush3.bf16.msra.mxu1 %v2562_v50 }
  0x3d   : > { %813 = vmatmul.mubr.bf16.gmra.mxu1 %v2522_v29 }
  0x3e   : > { %822 = vmatprep.mubr.bf16.mxu1 %v2849_v2  ;;  %700 = vmatmul.mubr.bf16.gmra.mxu0 %v2522_v29 }
  0x3f   : > { %709 = vmatprep.mubr.bf16.mxu0 %v2849_v2  ;;  %2221 = vmatpush3.bf16.msra.mxu0 %v2555_v43 }
  0x40   : > { %2222 = vmatprep.subr.bf16.mxu0 %v2556_v44 }
  0x43   : > { %2223 = vmatpush3.bf16.msra.mxu0 %v2556_v44 }
  0x44   : > { %2224 = vmatprep.subr.bf16.mxu0 %v2557_v45 }
  0x45   : > { %823 = vmatmul.mubr.bf16.gmra.mxu1 %v2523_v34 }
  0x46   : > { %832 = vmatprep.mubr.bf16.mxu1 %v2849_v2  ;;  %710 = vmatmul.mubr.bf16.gmra.mxu0 %v2523_v34 }
  0x47   : > { %719 = vmatprep.mubr.bf16.mxu0 %v2849_v2  ;;  %2225 = vmatpush3.bf16.msra.mxu0 %v2557_v45 }
  0x48   : > { %2226 = vmatprep.subr.bf16.mxu0 %v2558_v46 }
  0x4b   : > { %2227 = vmatpush3.bf16.msra.mxu0 %v2558_v46 }
  0x4c   : > { %2228 = vmatprep.subr.bf16.mxu0 %v2559_v47 }
  0x4d   : > { %833 = vmatmul.mubr.bf16.gmra.mxu1 %v2524_v37 }
  0x4e   : > { %842 = vmatprep.mubr.bf16.mxu1 %v2849_v2  ;;  %720 = vmatmul.mubr.bf16.gmra.mxu0 %v2524_v37 }
  0x4f   : > { %729 = vmatprep.mubr.bf16.mxu0 %v2849_v2  ;;  %2229 = vmatpush3.bf16.msra.mxu0 %v2559_v47 }
  0x50   : > { %2230 = vmatprep.subr.bf16.mxu0 %v2560_v48 }
  0x53   : > { %2231 = vmatpush3.bf16.msra.mxu0 %v2560_v48 }
  0x55   : > { %843 = vmatmul.mubr.bf16.gmra.mxu1 %v2525_v38 }
  0x56   : > { %852 = vmatprep.mubr.bf16.mxu1 %v2849_v2  ;;  %730 = vmatmul.mubr.bf16.gmra.mxu0 %v2525_v38 }
  0x57   : > { %739 = vmatprep.mubr.bf16.mxu0 %v2849_v2 }
  0x5d   : > { %853 = vmatmul.mubr.bf16.gmra.mxu1 %v2526_v39 }
  0x5e   : > { %862 = vmatprep.mubr.bf16.mxu1 %v2849_v2  ;;  %740 = vmatmul.mubr.bf16.gmra.mxu0 %v2526_v39 }
  0x5f   : > { %749 = vmatprep.mubr.bf16.mxu0 %v2849_v2 }
  0x65   : > { %863 = vmatmul.mubr.bf16.gmra.mxu1 %v2527_v40 }
  0x66   : > { %872 = vmatprep.mubr.bf16.mxu1 %v2849_v2  ;;  %750 = vmatmul.mubr.bf16.gmra.mxu0 %v2527_v40 }
  0x67   : > { %759 = vmatprep.mubr.bf16.mxu0 %v2849_v2 }
  0x6d   : > { %873 = vmatmul.mubr.bf16.gmra.mxu1 %v2528_v41 }
  0x6e   : > { %760 = vmatmul.mubr.bf16.gmra.mxu0 %v2528_v41 }
  0xf5   : > { %v804_v57 = vpop.f32.mrf.mxu1 }
  0xf6   : > { %v805_v59 = vadd.f32 %v804_v57, %v3097_v56  ;;  %v691_v17 = vpop.f32.mrf.mxu0 }
  0xf7   : > { %v806_v60 = vpop.f32.mrf.mxu1  ;;  %v692_v20 = vadd.f32 %v691_v17, %v3118_v13 }
  0xf8   : > { %915 = vst [vmem:[%s3103_s15] sm:$0xff] %v805_v59  ;;  %v807_v61 = vadd.f32 %v806_v60, %v3099_v58  ;;  %v693_v23 = vpop.f32.mrf.mxu0 }
  0xf9   : > { %v808_v62 = vpop.f32.mrf.mxu1  ;;  %883 = vst [vmem:[%s3127_s30] sm:$0xff] %v692_v20  ;;  %v694_v26 = vadd.f32 %v693_v23, %v3121_v16 }
  0xfa   : > { %v809_v63 = vadd.f32 %v808_v62, %v3097_v56  ;;  %2569 = vtanh.f32 %v807_v61  ;;  %v695_v29 = vpop.f32.mrf.mxu0 }
  0xfb   : > { %v810_v0 = vpop.f32.mrf.mxu1  ;;  %884 = vst [vmem:[%s3127_s30 + $0x8] sm:$0xff] %v694_v26  ;;  %v696_v31 = vadd.f32 %v695_v29, %v3118_v13 }
  0xfc   : > { %916 = vst [vmem:[%s3103_s15 + $0x8] sm:$0xff] %v809_v63  ;;  %v811_v1 = vadd.f32 %v810_v0, %v3099_v58  ;;  %v697_v33 = vpop.f32.mrf.mxu0 }
  0xfd   : > { %v814_v2 = vpop.f32.mrf.mxu1  ;;  %885 = vst [vmem:[%s3127_s30 + $0x10] sm:$0xff] %v696_v31  ;;  %v698_v35 = vadd.f32 %v697_v33, %v3121_v16 }
  0xfe   : > { %2571 = vtanh.f32 %v811_v1  ;;  %v815_v3 = vadd.f32 %v814_v2, %v3097_v56  ;;  %v701_v36 = vpop.f32.mrf.mxu0 }
  0xff   : > { %v816_v4 = vpop.f32.mrf.mxu1  ;;  %886 = vst [vmem:[%s3127_s30 + $0x18] sm:$0xff] %v698_v35  ;;  %v702_v39 = vadd.f32 %v701_v36, %v3118_v13 }
 0x100   : > { %917 = vst [vmem:[%s3103_s15 + $0x10] sm:$0xff] %v815_v3  ;;  %v817_v5 = vadd.f32 %v816_v4, %v3099_v58  ;;  %v703_v42 = vpop.f32.mrf.mxu0 }
 0x101   : > { %v818_v6 = vpop.f32.mrf.mxu1  ;;  %887 = vst [vmem:[%s3127_s30 + $0x20] sm:$0xff] %v702_v39  ;;  %v704_v45 = vadd.f32 %v703_v42, %v3121_v16 }
 0x102   : > { %v819_v8 = vadd.f32 %v818_v6, %v3097_v56  ;;  %2573 = vtanh.f32 %v817_v5  ;;  %v705_v48 = vpop.f32.mrf.mxu0 }
 0x103   : > { %v820_v9 = vpop.f32.mrf.mxu1  ;;  %888 = vst [vmem:[%s3127_s30 + $0x28] sm:$0xff] %v704_v45  ;;  %v706_v50 = vadd.f32 %v705_v48, %v3118_v13 }
 0x104   : > { %918 = vst [vmem:[%s3103_s15 + $0x18] sm:$0xff] %v819_v8  ;;  %v821_v11 = vadd.f32 %v820_v9, %v3099_v58  ;;  %v707_v52 = vpop.f32.mrf.mxu0 }
 0x105   : > { %v824_v12 = vpop.f32.mrf.mxu1  ;;  %889 = vst [vmem:[%s3127_s30 + $0x30] sm:$0xff] %v706_v50  ;;  %v708_v54 = vadd.f32 %v707_v52, %v3121_v16 }
 0x106   : > { %2575 = vtanh.f32 %v821_v11  ;;  %v825_v14 = vadd.f32 %v824_v12, %v3097_v56  ;;  %v711_v55 = vpop.f32.mrf.mxu0 }
 0x107   : > { %v826_v15 = vpop.f32.mrf.mxu1  ;;  %v2570_v21 = vpop.eup %2569  ;;  %890 = vst [vmem:[%s3127_s30 + $0x38] sm:$0xff] %v708_v54  ;;  %v712_v60 = vadd.f32 %v711_v55, %v3118_v13 }
 0x108   : > { %919 = vst [vmem:[%s3103_s15 + $0x20] sm:$0xff] %v825_v14  ;;  %v827_v18 = vadd.f32 %v826_v15, %v3099_v58  ;;  %v713_v63 = vpop.f32.mrf.mxu0 }
 0x109   : > { %v828_v19 = vpop.f32.mrf.mxu1  ;;  %891 = vst [vmem:[%s3127_s30 + $0x40] sm:$0xff] %v712_v60  ;;  %v714_v2 = vadd.f32 %v713_v63, %v3121_v16 }
 0x10a   : > { %v829_v22 = vadd.f32 %v828_v19, %v3097_v56  ;;  %2577 = vtanh.f32 %v827_v18  ;;  %v715_v5 = vpop.f32.mrf.mxu0 }
 0x10b   : > { %v2572_v24 = vpop.eup %2571  ;;  %v830_v25 = vpop.f32.mrf.mxu1  ;;  %892 = vst [vmem:[%s3127_s30 + $0x48] sm:$0xff] %v714_v2  ;;  %v716_v7 = vadd.f32 %v715_v5, %v3118_v13 }
 0x10c   : > { %920 = vst [vmem:[%s3103_s15 + $0x28] sm:$0xff] %v829_v22  ;;  %v831_v27 = vadd.f32 %v830_v25, %v3099_v58  ;;  %v947_v28 = vpack.c.bf16 %v2572_v24, %v2570_v21  ;;  %v717_v9 = vpop.f32.mrf.mxu0 }
 0x10d   : > { %v834_v30 = vpop.f32.mrf.mxu1  ;;  %893 = vst [vmem:[%s3127_s30 + $0x50] sm:$0xff] %v716_v7  ;;  %v718_v11 = vadd.f32 %v717_v9, %v3121_v16 }
 0x10e   : > { %2579 = vtanh.f32 %v831_v27  ;;  %v835_v32 = vadd.f32 %v834_v30, %v3097_v56  ;;  %2232 = vmatprep.mubr.bf16.mxu0 %v947_v28  ;;  %v721_v12 = vpop.f32.mrf.mxu0 }
 0x10f   : > { %v836_v34 = vpop.f32.mrf.mxu1  ;;  %v2574_v40 = vpop.eup %2573  ;;  %894 = vst [vmem:[%s3127_s30 + $0x58] sm:$0xff] %v718_v11  ;;  %v722_v17 = vadd.f32 %v721_v12, %v3118_v13 }
 0x110   : > { %921 = vst [vmem:[%s3103_s15 + $0x30] sm:$0xff] %v835_v32  ;;  %v837_v37 = vadd.f32 %v836_v34, %v3099_v58  ;;  %v723_v20 = vpop.f32.mrf.mxu0 }
 0x111   : > { %v838_v38 = vpop.f32.mrf.mxu1  ;;  %895 = vst [vmem:[%s3127_s30 + $0x60] sm:$0xff] %v722_v17  ;;  %v724_v23 = vadd.f32 %v723_v20, %v3121_v16 }
 0x112   : > { %v839_v41 = vadd.f32 %v838_v38, %v3097_v56  ;;  %2581 = vtanh.f32 %v837_v37  ;;  %v725_v26 = vpop.f32.mrf.mxu0 }
 0x113   : > { %v2576_v43 = vpop.eup %2575  ;;  %v840_v44 = vpop.f32.mrf.mxu1  ;;  %896 = vst [vmem:[%s3127_s30 + $0x68] sm:$0xff] %v724_v23  ;;  %v726_v28 = vadd.f32 %v725_v26, %v3118_v13 }
 0x114   : > { %922 = vst [vmem:[%s3103_s15 + $0x38] sm:$0xff] %v839_v41  ;;  %v841_v46 = vadd.f32 %v840_v44, %v3099_v58  ;;  %v948_v47 = vpack.c.bf16 %v2576_v43, %v2574_v40  ;;  %v727_v30 = vpop.f32.mrf.mxu0 }
 0x115   : > { %v844_v49 = vpop.f32.mrf.mxu1  ;;  %897 = vst [vmem:[%s3127_s30 + $0x70] sm:$0xff] %v726_v28  ;;  %v728_v32 = vadd.f32 %v727_v30, %v3121_v16  ;;  %v2563_v28 = vld [vmem:[%s3613_s5 + $0x28] sm:$0xff]  }
 0x116   : > { %2583 = vtanh.f32 %v841_v46  ;;  %v845_v51 = vadd.f32 %v844_v49, %v3097_v56  ;;  %2233 = vmatmul.mubr.bf16.vlgmr.msra.gmra.mxu0 %v948_v47  ;;  %v731_v33 = vpop.f32.mrf.mxu0  ;;  %2252 = vmatprep.subr.bf16.mxu1 %v2563_v28  ;;  %v2567_v30 = vld [vmem:[%s3613_s5 + $0x8] sm:$0xff]  }
 0x117   : > { %v846_v53 = vpop.f32.mrf.mxu1  ;;  %v2578_v61 = vpop.eup %2577  ;;  %898 = vst [vmem:[%s3127_s30 + $0x78] sm:$0xff] %v728_v32  ;;  %v732_v36 = vadd.f32 %v731_v33, %v3118_v13  ;;  %2253 = vmatpush3.bf16.msra.mxu1 %v2563_v28  ;;  %v3245_v33 = vld [vmem:[%s3612_s4] ss:$0 sm:$0xff] }
 0x118   : > { %923 = vst [vmem:[%s3103_s15 + $0x40] sm:$0xff] %v845_v51  ;;  %v847_v57 = vadd.f32 %v846_v53, %v3099_v58  ;;  %v733_v39 = vpop.f32.mrf.mxu0 }
 0x119   : > { %v848_v59 = vpop.f32.mrf.mxu1  ;;  %899 = vst [vmem:[%s3127_s30 + $0x80] sm:$0xff] %v732_v36  ;;  %v734_v42 = vadd.f32 %v733_v39, %v3121_v16 }
 0x11a   : > { %v849_v62 = vadd.f32 %v848_v59, %v3097_v56  ;;  %2585 = vtanh.f32 %v847_v57  ;;  %v735_v45 = vpop.f32.mrf.mxu0 }
 0x11b   : > { %v2580_v0 = vpop.eup %2579  ;;  %v850_v1 = vpop.f32.mrf.mxu1  ;;  %900 = vst [vmem:[%s3127_s30 + $0x88] sm:$0xff] %v734_v42  ;;  %v736_v47 = vadd.f32 %v735_v45, %v3118_v13 }
 0x11c   : > { %924 = vst [vmem:[%s3103_s15 + $0x48] sm:$0xff] %v849_v62  ;;  %v851_v3 = vadd.f32 %v850_v1, %v3099_v58  ;;  %v949_v4 = vpack.c.bf16 %v2580_v0, %v2578_v61  ;;  %v737_v49 = vpop.f32.mrf.mxu0 }
 0x11d   : > { %v854_v6 = vpop.f32.mrf.mxu1  ;;  %901 = vst [vmem:[%s3127_s30 + $0x90] sm:$0xff] %v736_v47  ;;  %v738_v51 = vadd.f32 %v737_v49, %v3121_v16 }
 0x11e   : > { %2587 = vtanh.f32 %v851_v3  ;;  %v855_v8 = vadd.f32 %v854_v6, %v3097_v56  ;;  %2236 = vmatprep.mubr.bf16.mxu0 %v949_v4  ;;  %v741_v52 = vpop.f32.mrf.mxu0 }
 0x11f   : > { %v856_v10 = vpop.f32.mrf.mxu1  ;;  %v2582_v18 = vpop.eup %2581  ;;  %902 = vst [vmem:[%s3127_s30 + $0x98] sm:$0xff] %v738_v51  ;;  %v742_v55 = vadd.f32 %v741_v52, %v3118_v13 }
 0x120   : > { %925 = vst [vmem:[%s3103_s15 + $0x50] sm:$0xff] %v855_v8  ;;  %v857_v14 = vadd.f32 %v856_v10, %v3099_v58  ;;  %v743_v60 = vpop.f32.mrf.mxu0 }
 0x121   : > { %v858_v15 = vpop.f32.mrf.mxu1  ;;  %903 = vst [vmem:[%s3127_s30 + $0xa0] sm:$0xff] %v742_v55  ;;  %v744_v63 = vadd.f32 %v743_v60, %v3121_v16 }
 0x122   : > { %v859_v19 = vadd.f32 %v858_v15, %v3097_v56  ;;  %2589 = vtanh.f32 %v857_v14  ;;  %v745_v2 = vpop.f32.mrf.mxu0 }
 0x123   : > { %v2584_v21 = vpop.eup %2583  ;;  %v860_v22 = vpop.f32.mrf.mxu1  ;;  %904 = vst [vmem:[%s3127_s30 + $0xa8] sm:$0xff] %v744_v63  ;;  %v746_v3 = vadd.f32 %v745_v2, %v3118_v13 }
 0x124   : > { %926 = vst [vmem:[%s3103_s15 + $0x58] sm:$0xff] %v859_v19  ;;  %v861_v24 = vadd.f32 %v860_v22, %v3099_v58  ;;  %v950_v25 = vpack.c.bf16 %v2584_v21, %v2582_v18 }
 0x125   : > { %v864_v27 = vpop.f32.mrf.mxu1  ;;  %905 = vst [vmem:[%s3127_s30 + $0xb0] sm:$0xff] %v746_v3 }
 0x126   : > { %2591 = vtanh.f32 %v861_v24  ;;  %v865_v29 = vadd.f32 %v864_v27, %v3097_v56  ;;  %2237 = vmatmul.mubr.bf16.gmra.mxu0 %v950_v25 }
 0x127   : > { %v866_v31 = vpop.f32.mrf.mxu1  ;;  %v2586_v37 = vpop.eup %2585 }
 0x128   : > { %927 = vst [vmem:[%s3103_s15 + $0x60] sm:$0xff] %v865_v29  ;;  %v867_v34 = vadd.f32 %v866_v31, %v3099_v58  ;;  %v2564_v29 = vld [vmem:[%s3613_s5 + $0x20] sm:$0xff]  }
 0x129   : > { %v868_v35 = vpop.f32.mrf.mxu1  ;;  %2254 = vmatprep.subr.bf16.mxu1 %v2564_v29  ;;  %v2568_v31 = vld [vmem:[%s3613_s5] sm:$0xff]  }
 0x12a   : > { %v869_v38 = vadd.f32 %v868_v35, %v3097_v56  ;;  %2593 = vtanh.f32 %v867_v34  ;;  %2255 = vmatpush3.bf16.msra.mxu1 %v2564_v29 }
 0x12b   : > { %v2588_v40 = vpop.eup %2587  ;;  %v870_v41 = vpop.f32.mrf.mxu1 }
 0x12c   : > { %928 = vst [vmem:[%s3103_s15 + $0x68] sm:$0xff] %v869_v38  ;;  %v871_v43 = vadd.f32 %v870_v41, %v3099_v58  ;;  %v951_v44 = vpack.c.bf16 %v2588_v40, %v2586_v37 }
 0x12d   : > { %v874_v46 = vpop.f32.mrf.mxu1 }
 0x12e   : > { %2595 = vtanh.f32 %v871_v43  ;;  %v875_v48 = vadd.f32 %v874_v46, %v3097_v56  ;;  %2240 = vmatprep.mubr.bf16.mxu0 %v951_v44 }
 0x12f   : > { %v876_v50 = vpop.f32.mrf.mxu1  ;;  %v2590_v57 = vpop.eup %2589 }
 0x130   : > { %929 = vst [vmem:[%s3103_s15 + $0x70] sm:$0xff] %v875_v48  ;;  %v877_v53 = vadd.f32 %v876_v50, %v3099_v58 }
 0x131   : > { %v878_v54 = vpop.f32.mrf.mxu1 }
 0x132   : > { %v879_v59 = vadd.f32 %v878_v54, %v3097_v56  ;;  %2597 = vtanh.f32 %v877_v53  ;;  %v747_v56 = vpop.f32.mrf.mxu0 }
 0x133   : > { %v2592_v61 = vpop.eup %2591  ;;  %v880_v62 = vpop.f32.mrf.mxu1  ;;  %v748_v4 = vadd.f32 %v747_v56, %v3121_v16 }
 0x134   : > { %930 = vst [vmem:[%s3103_s15 + $0x78] sm:$0xff] %v879_v59  ;;  %v881_v0 = vadd.f32 %v880_v62, %v3099_v58  ;;  %v952_v1 = vpack.c.bf16 %v2592_v61, %v2590_v57  ;;  %v751_v5 = vpop.f32.mrf.mxu0 }
 0x135   : > { %906 = vst [vmem:[%s3127_s30 + $0xb8] sm:$0xff] %v748_v4  ;;  %v752_v58 = vadd.f32 %v751_v5, %v3118_v13 }
 0x136   : > { %2599 = vtanh.f32 %v881_v0  ;;  %2241 = vmatmul.mubr.bf16.gmra.mxu0 %v952_v1  ;;  %v753_v7 = vpop.f32.mrf.mxu0 }
 0x137   : > { %v2594_v6 = vpop.eup %2593  ;;  %907 = vst [vmem:[%s3127_s30 + $0xc0] sm:$0xff] %v752_v58  ;;  %v754_v9 = vadd.f32 %v753_v7, %v3121_v16 }
 0x138   : > { %v755_v11 = vpop.f32.mrf.mxu0 }
 0x139   : > { %908 = vst [vmem:[%s3127_s30 + $0xc8] sm:$0xff] %v754_v9  ;;  %v756_v12 = vadd.f32 %v755_v11, %v3118_v13 }
 0x13a   : > { %v757_v14 = vpop.f32.mrf.mxu0 }
 0x13b   : > { %v2596_v8 = vpop.eup %2595  ;;  %909 = vst [vmem:[%s3127_s30 + $0xd0] sm:$0xff] %v756_v12  ;;  %v758_v15 = vadd.f32 %v757_v14, %v3121_v16 }
 0x13c   : > { %v953_v10 = vpack.c.bf16 %v2596_v8, %v2594_v6  ;;  %v761_v17 = vpop.f32.mrf.mxu0 }
 0x13d   : > { %910 = vst [vmem:[%s3127_s30 + $0xd8] sm:$0xff] %v758_v15  ;;  %v762_v18 = vadd.f32 %v761_v17, %v3118_v13 }
 0x13e   : > { %2244 = vmatprep.mubr.bf16.mxu0 %v953_v10  ;;  %v763_v20 = vpop.f32.mrf.mxu0 }
 0x13f   : > { %v2598_v19 = vpop.eup %2597  ;;  %911 = vst [vmem:[%s3127_s30 + $0xe0] sm:$0xff] %v762_v18  ;;  %v764_v22 = vadd.f32 %v763_v20, %v3121_v16 }
 0x140   : > { %v765_v24 = vpop.f32.mrf.mxu0 }
 0x141   : > { %912 = vst [vmem:[%s3127_s30 + $0xe8] sm:$0xff] %v764_v22  ;;  %v766_v25 = vadd.f32 %v765_v24, %v3118_v13  ;;  %v2565_v13 = vld [vmem:[%s3613_s5 + $0x18] sm:$0xff]  }
 0x142   : > { %v767_v26 = vpop.f32.mrf.mxu0  ;;  %2256 = vmatprep.subr.bf16.mxu1 %v2565_v13 }
 0x143   : > { %v2600_v21 = vpop.eup %2599  ;;  %913 = vst [vmem:[%s3127_s30 + $0xf0] sm:$0xff] %v766_v25  ;;  %v768_v27 = vadd.f32 %v767_v26, %v3121_v16  ;;  %v2566_v16 = vld [vmem:[%s3613_s5 + $0x10] sm:$0xff]   ;;  %2257 = vmatpush3.bf16.msra.mxu1 %v2565_v13 }
 0x144   : > { %v954_v23 = vpack.c.bf16 %v2600_v21, %v2598_v19  ;;  %2258 = vmatprep.subr.bf16.mxu1 %v2566_v16 }
 0x145   : > { %914 = vst [vmem:[%s3127_s30 + $0xf8] sm:$0xff] %v768_v27  ;;  %v2115_v27 = vld [vmem:[%s3614_s6] ss:$0 sm:$0xff] }
 0x146   : > { %2245 = vmatmul.mubr.bf16.gmra.mxu0 %v954_v23 }
 0x147   : > { %2259 = vmatpush3.bf16.msra.mxu1 %v2566_v16 }
 0x148   : > { %2260 = vmatprep.subr.bf16.mxu1 %v2567_v30 }
 0x14b   : > { %2261 = vmatpush3.bf16.msra.mxu1 %v2567_v30 }
 0x14c   : > { %2262 = vmatprep.subr.bf16.mxu1 %v2568_v31 }
 0x14f   : > { %2263 = vmatpush3.bf16.msra.mxu1 %v2568_v31 }
 0x1d6   : > { %v2234_v32 = vpop.f32.mrf.mxu0 }
 0x1d7   : > { %v1069_v38 = vadd.f32 %v2234_v32, %v3245_v33 }
 0x1d8   : > { %v1060_v34 = vpop.f32.mrf.mxu0 }
 0x1d9   : > { %v1061_v35 = vadd.f32 %v3245_v33, %v1060_v34 }
 0x1da   : > { %v2235_v36 = vpop.f32.mrf.mxu0 }
 0x1db   : > { %v1072_v37 = vadd.f32 %v2235_v36, %v3245_v33  ;;  %2601 = vtanh.f32 %v1061_v35 }
 0x1dc   : > { %v1063_v39 = vpop.f32.mrf.mxu0 }
 0x1dd   : > { %v1064_v40 = vadd.f32 %v3245_v33, %v1063_v39  ;;  %2603 = vtanh.f32 %v1072_v37 }
 0x1df   : > { %2605 = vtanh.f32 %v1064_v40 }
 0x1e0   : > { %2607 = vtanh.f32 %v1069_v38 }
 0x1e6   : > { %v2238_v41 = vpop.f32.mrf.mxu0 }
 0x1e7   : > { %v1085_v49 = vadd.f32 %v2238_v41, %v3245_v33 }
 0x1e8   : > { %v1076_v42 = vpop.f32.mrf.mxu0  ;;  %v2602_v44 = vpop.eup %2601 }
 0x1e9   : > { %v1077_v43 = vadd.f32 %v3245_v33, %v1076_v42 }
 0x1ea   : > { %v2239_v45 = vpop.f32.mrf.mxu0  ;;  %v2604_v46 = vpop.eup %2603 }
 0x1eb   : > { %v1088_v47 = vadd.f32 %v2239_v45, %v3245_v33  ;;  %2609 = vtanh.f32 %v1077_v43 }
 0x1ec   : > { %v2606_v48 = vpop.eup %2605  ;;  %v1079_v50 = vpop.f32.mrf.mxu0 }
 0x1ed   : > { %v2608_v51 = vpop.eup %2607  ;;  %v1080_v52 = vadd.f32 %v3245_v33, %v1079_v50  ;;  %v1139_v53 = vpack.c.bf16 %v2606_v48, %v2602_v44  ;;  %2611 = vtanh.f32 %v1088_v47 }
 0x1ee   : > { %v1140_v54 = vpack.c.bf16 %v2604_v46, %v2608_v51 }
 0x1ef   : > { %2613 = vtanh.f32 %v1080_v52  ;;  %2264 = vmatprep.mubr.bf16.mxu1 %v1139_v53 }
 0x1f0   : > { %2615 = vtanh.f32 %v1085_v49  ;;  %2265 = vmatmul.mubr.bf16.vlgmr.msra.gmra.mxu1 %v1140_v54 }
 0x1f6   : > { %v2242_v55 = vpop.f32.mrf.mxu0 }
 0x1f7   : > { %v1101_v1 = vadd.f32 %v2242_v55, %v3245_v33 }
 0x1f8   : > { %v1092_v57 = vpop.f32.mrf.mxu0  ;;  %v2610_v60 = vpop.eup %2609 }
 0x1f9   : > { %v1093_v59 = vadd.f32 %v3245_v33, %v1092_v57 }
 0x1fa   : > { %v2243_v61 = vpop.f32.mrf.mxu0  ;;  %v2612_v62 = vpop.eup %2611 }
 0x1fb   : > { %v1104_v63 = vadd.f32 %v2243_v61, %v3245_v33  ;;  %2617 = vtanh.f32 %v1093_v59 }
 0x1fc   : > { %v2614_v0 = vpop.eup %2613  ;;  %v1095_v2 = vpop.f32.mrf.mxu0 }
 0x1fd   : > { %v2616_v3 = vpop.eup %2615  ;;  %v1096_v56 = vadd.f32 %v3245_v33, %v1095_v2  ;;  %v1141_v4 = vpack.c.bf16 %v2614_v0, %v2610_v60  ;;  %2619 = vtanh.f32 %v1104_v63 }
 0x1fe   : > { %v1142_v5 = vpack.c.bf16 %v2612_v62, %v2616_v3 }
 0x1ff   : > { %2621 = vtanh.f32 %v1096_v56  ;;  %2268 = vmatprep.mubr.bf16.mxu1 %v1141_v4 }
 0x200   : > { %2623 = vtanh.f32 %v1101_v1  ;;  %2269 = vmatmul.mubr.bf16.gmra.mxu1 %v1142_v5 }
 0x206   : > { %v2246_v58 = vpop.f32.mrf.mxu0 }
 0x207   : > { %v1117_v14 = vadd.f32 %v2246_v58, %v3245_v33 }
 0x208   : > { %v1108_v6 = vpop.f32.mrf.mxu0  ;;  %v2618_v8 = vpop.eup %2617 }
 0x209   : > { %v1109_v7 = vadd.f32 %v3245_v33, %v1108_v6 }
 0x20a   : > { %v2247_v9 = vpop.f32.mrf.mxu0  ;;  %v2620_v10 = vpop.eup %2619 }
 0x20b   : > { %v1120_v11 = vadd.f32 %v2247_v9, %v3245_v33  ;;  %2625 = vtanh.f32 %v1109_v7 }
 0x20c   : > { %v2622_v12 = vpop.eup %2621  ;;  %v1111_v15 = vpop.f32.mrf.mxu0 }
 0x20d   : > { %v2624_v17 = vpop.eup %2623  ;;  %v1112_v18 = vadd.f32 %v3245_v33, %v1111_v15  ;;  %v1143_v19 = vpack.c.bf16 %v2622_v12, %v2618_v8  ;;  %2627 = vtanh.f32 %v1120_v11 }
 0x20e   : > { %v1144_v20 = vpack.c.bf16 %v2620_v10, %v2624_v17 }
 0x20f   : > { %2629 = vtanh.f32 %v1112_v18  ;;  %2272 = vmatprep.mubr.bf16.mxu1 %v1143_v19 }
 0x210   : > { %2631 = vtanh.f32 %v1117_v14  ;;  %2273 = vmatmul.mubr.bf16.gmra.mxu1 %v1144_v20 }
 0x218   : > { %v2626_v21 = vpop.eup %2625 }
 0x21a   : > { %v2628_v22 = vpop.eup %2627 }
 0x21c   : > { %v2630_v23 = vpop.eup %2629 }
 0x21d   : > { %v2632_v24 = vpop.eup %2631  ;;  %v1145_v25 = vpack.c.bf16 %v2630_v23, %v2626_v21 }
 0x21e   : > { %v1146_v26 = vpack.c.bf16 %v2628_v22, %v2632_v24 }
 0x21f   : > { %2276 = vmatprep.mubr.bf16.mxu1 %v1145_v25 }
 0x220   : > { %2277 = vmatmul.mubr.bf16.gmra.mxu1 %v1146_v26 }
 0x2b0   : > { %v2266_v28 = vpop.f32.mrf.mxu1 }
 0x2b1   : > { %v1261_v29 = vadd.f32 %v2266_v28, %v2115_v27 }
 0x2b2   : > { %v1252_v13 = vpop.f32.mrf.mxu1 }
 0x2b3   : > { %1317 = vst [vmem:[%s3267_s24 + $0x10] sm:$0xff] %v1261_v29  ;;  %v1253_v16 = vadd.f32 %v2115_v27, %v1252_v13 }
 0x2b4   : > { %v2267_v30 = vpop.f32.mrf.mxu1 }
 0x2b5   : > { %1315 = vst [vmem:[%s3267_s24] sm:$0xff] %v1253_v16  ;;  %v1264_v31 = vadd.f32 %v2267_v30, %v2115_v27 }
 0x2b6   : > { %v1255_v32 = vpop.f32.mrf.mxu1 }
 0x2b7   : > { %1318 = vst [vmem:[%s3267_s24 + $0x18] sm:$0xff] %v1264_v31  ;;  %v1256_v33 = vadd.f32 %v2115_v27, %v1255_v32 }
 0x2b9   : > { %1316 = vst [vmem:[%s3267_s24 + $0x8] sm:$0xff] %v1256_v33 }
 0x2c0   : > { %v2270_v34 = vpop.f32.mrf.mxu1 }
 0x2c1   : > { %v1277_v35 = vadd.f32 %v2270_v34, %v2115_v27 }
 0x2c2   : > { %v1268_v36 = vpop.f32.mrf.mxu1 }
 0x2c3   : > { %1321 = vst [vmem:[%s3267_s24 + $0x30] sm:$0xff] %v1277_v35  ;;  %v1269_v37 = vadd.f32 %v2115_v27, %v1268_v36 }
 0x2c4   : > { %v2271_v38 = vpop.f32.mrf.mxu1 }
 0x2c5   : > { %1319 = vst [vmem:[%s3267_s24 + $0x20] sm:$0xff] %v1269_v37  ;;  %v1280_v39 = vadd.f32 %v2271_v38, %v2115_v27 }
 0x2c6   : > { %v1271_v40 = vpop.f32.mrf.mxu1 }
 0x2c7   : > { %1322 = vst [vmem:[%s3267_s24 + $0x38] sm:$0xff] %v1280_v39  ;;  %v1272_v41 = vadd.f32 %v2115_v27, %v1271_v40 }
 0x2c9   : > { %1320 = vst [vmem:[%s3267_s24 + $0x28] sm:$0xff] %v1272_v41 }
 0x2d0   : > { %v2274_v42 = vpop.f32.mrf.mxu1 }
 0x2d1   : > { %v1293_v43 = vadd.f32 %v2274_v42, %v2115_v27 }
 0x2d2   : > { %v1284_v44 = vpop.f32.mrf.mxu1 }
 0x2d3   : > { %1325 = vst [vmem:[%s3267_s24 + $0x50] sm:$0xff] %v1293_v43  ;;  %v1285_v45 = vadd.f32 %v2115_v27, %v1284_v44 }
 0x2d4   : > { %v2275_v46 = vpop.f32.mrf.mxu1 }
 0x2d5   : > { %1323 = vst [vmem:[%s3267_s24 + $0x40] sm:$0xff] %v1285_v45  ;;  %v1296_v47 = vadd.f32 %v2275_v46, %v2115_v27 }
 0x2d6   : > { %v1287_v48 = vpop.f32.mrf.mxu1 }
 0x2d7   : > { %1326 = vst [vmem:[%s3267_s24 + $0x58] sm:$0xff] %v1296_v47  ;;  %v1288_v49 = vadd.f32 %v2115_v27, %v1287_v48 }
 0x2d9   : > { %1324 = vst [vmem:[%s3267_s24 + $0x48] sm:$0xff] %v1288_v49 }
 0x2e0   : > { %v2278_v50 = vpop.f32.mrf.mxu1 }
 0x2e1   : > { %v1309_v51 = vadd.f32 %v2278_v50, %v2115_v27 }
 0x2e2   : > { %v1300_v52 = vpop.f32.mrf.mxu1 }
 0x2e3   : > { %1329 = vst [vmem:[%s3267_s24 + $0x70] sm:$0xff] %v1309_v51  ;;  %v1301_v53 = vadd.f32 %v2115_v27, %v1300_v52 }
 0x2e4   : > { %v2279_v54 = vpop.f32.mrf.mxu1 }
 0x2e5   : > { %1327 = vst [vmem:[%s3267_s24 + $0x60] sm:$0xff] %v1301_v53  ;;  %v1312_v55 = vadd.f32 %v2279_v54, %v2115_v27  ;;  %1345 = sbr.rel (!%p2925_p4) target bundleno = 794 (0x31a), region = 52 }
 0x2e6   : > { %v1303_v57 = vpop.f32.mrf.mxu1 }
 0x2e7   : > { %1330 = vst [vmem:[%s3267_s24 + $0x78] sm:$0xff] %v1312_v55  ;;  %v1304_v59 = vadd.f32 %v2115_v27, %v1303_v57 }
 0x2e9   : > { %1328 = vst [vmem:[%s3267_s24 + $0x68] sm:$0xff] %v1304_v59 }
 0x2ea   : > { %s3638_s14 = smov (!%p1348_p8, %s1347_s14), 16 }
 0x2eb   : > { %s2173_s28 = sshll.u32 %s3638_s14, 8 }
 0x2ec   : > { %p2133_p9 = scmp.eq.s32.totalorder %s2173_s28, 0 }
 0x2ed   : > { %s3298_s29 = sshrl.u32 (!%p2133_p9), %s3638_s14, 4 }
 0x2ee   : > { %1358 = sbr.rel (%p2133_p9) target bundleno = 794 (0x31a), region = 56  ;;  %p2134_p10 = scmp.le.s32.totalorder (!%p2133_p9), %s3298_s29, 0 }
 0x2f3   : > { %1939 = sbr.rel (%p2134_p10) target bundleno = 777 (0x309), region = 248  ;;  %s3623_s11 = smov (!%p2134_p10), %s3292_s23 }
 0x2f4   : > { %s3624_s18 = smov (!%p2134_p10), %s3127_s30  ;;  %s3307_s19 = smov (!%p2134_p10), 0  }
 0x2f5   : > { %s3309_s21 = smov (!%p2134_p10), 0  }
 0x2f8 LB: >> { %v1371_v60 = vld [vmem:[%s2759_s18] sm:$0xff]  ;;  %v1373_v61 = vld [vmem:[%s2759_s18 + $0x10] sm:$0xff]  ;;  %s1435_s22 = sadd.s32 1, %s2763_s19  ;;  %v1403_v10 = vld [vmem:[%s2759_s18 + $0x8] sm:$0xff]  ;;  %s1365_s21 = sadd.s32 1, %s2767_s21   ;;  %s2767_s21 = sphi %s3309_s21, %s1365_s21   ;;  %s2763_s19 = sphi %s3307_s19, %s3627_s19   ;;  %s2759_s18 = sphi %s3624_s18, %s3626_s18   ;;  %s2755_s11 = sphi %s3623_s11, %s3625_s11  }
 0x2f9   : >> { %v1375_v62 = vld [vmem:[%s2759_s18 + $0x20] sm:$0xff]  ;;  %1372 = vst [vmem:[%s2755_s11] sm:$0xff] %v1371_v60  ;;  %1374 = vst [vmem:[%s2755_s11 + $0x10] sm:$0xff] %v1373_v61  ;;  %v1377_v63 = vld [vmem:[%s2759_s18 + $0x30] sm:$0xff]  ;;  %p1436_p11 = scmp.ge.s32.totalorder %s1435_s22, %s3298_s29  ;;  %p1364_p12 = scmp.ge.s32.totalorder %s1365_s21, %s3298_s29 }
 0x2fa   : >> { %1376 = vst [vmem:[%s2755_s11 + $0x20] sm:$0xff] %v1375_v62  ;;  %v1379_v0 = vld [vmem:[%s2759_s18 + $0x40] sm:$0xff]  ;;  %v1381_v1 = vld [vmem:[%s2759_s18 + $0x50] sm:$0xff]  ;;  %1378 = vst [vmem:[%s2755_s11 + $0x30] sm:$0xff] %v1377_v63 }
 0x2fb   : >> { %1380 = vst [vmem:[%s2755_s11 + $0x40] sm:$0xff] %v1379_v0  ;;  %1382 = vst [vmem:[%s2755_s11 + $0x50] sm:$0xff] %v1381_v1  ;;  %v1383_v2 = vld [vmem:[%s2759_s18 + $0x60] sm:$0xff]  ;;  %v1385_v3 = vld [vmem:[%s2759_s18 + $0x70] sm:$0xff]  ;;  %s3640_s22 = smov (%p1436_p11, %s1435_s22), 0 }
 0x2fc   : >> { %v1387_v56 = vld [vmem:[%s2759_s18 + $0x80] sm:$0xff]  ;;  %1384 = vst [vmem:[%s2755_s11 + $0x60] sm:$0xff] %v1383_v2  ;;  %1386 = vst [vmem:[%s2755_s11 + $0x70] sm:$0xff] %v1385_v3  ;;  %v1389_v4 = vld [vmem:[%s2759_s18 + $0x90] sm:$0xff]  ;;  %s2135_s25 = sshll.u32 %s3640_s22, 8  ;;  %s3627_s19 = smov %s3640_s22 }
 0x2fd   : >> { %1388 = vst [vmem:[%s2755_s11 + $0x80] sm:$0xff] %v1387_v56  ;;  %v1391_v5 = vld [vmem:[%s2759_s18 + $0xa0] sm:$0xff]  ;;  %v1393_v58 = vld [vmem:[%s2759_s18 + $0xb0] sm:$0xff]  ;;  %1390 = vst [vmem:[%s2755_s11 + $0x90] sm:$0xff] %v1389_v4  ;;  %s3365_s26 = scalar_lea.vmem %s3127_s30, %s2135_s25 [#allocation2]   ;;  %s1441_s27 = scalar_lea.vmem %s3292_s23, %s2135_s25  }
 0x2fe   : >> { %1392 = vst [vmem:[%s2755_s11 + $0xa0] sm:$0xff] %v1391_v5  ;;  %1394 = vst [vmem:[%s2755_s11 + $0xb0] sm:$0xff] %v1393_v58  ;;  %v1395_v6 = vld [vmem:[%s2759_s18 + $0xc0] sm:$0xff]  ;;  %v1397_v7 = vld [vmem:[%s2759_s18 + $0xd0] sm:$0xff] }
 0x2ff   : >> { %v1399_v8 = vld [vmem:[%s2759_s18 + $0xe0] sm:$0xff]  ;;  %1396 = vst [vmem:[%s2755_s11 + $0xc0] sm:$0xff] %v1395_v6  ;;  %1398 = vst [vmem:[%s2755_s11 + $0xd0] sm:$0xff] %v1397_v7  ;;  %v1401_v9 = vld [vmem:[%s2759_s18 + $0xf0] sm:$0xff] }
 0x300   : >> { %1400 = vst [vmem:[%s2755_s11 + $0xe0] sm:$0xff] %v1399_v8  ;;  %v1405_v11 = vld [vmem:[%s2759_s18 + $0x18] sm:$0xff]  ;;  %1402 = vst [vmem:[%s2755_s11 + $0xf0] sm:$0xff] %v1401_v9  ;;  %v1407_v12 = vld [vmem:[%s2759_s18 + $0x28] sm:$0xff] }
 0x301   : >> { %1404 = vst [vmem:[%s2755_s11 + $0x8] sm:$0xff] %v1403_v10  ;;  %1406 = vst [vmem:[%s2755_s11 + $0x18] sm:$0xff] %v1405_v11  ;;  %v1409_v14 = vld [vmem:[%s2759_s18 + $0x38] sm:$0xff]  ;;  %v1411_v15 = vld [vmem:[%s2759_s18 + $0x48] sm:$0xff] }
 0x302   : >> { %1408 = vst [vmem:[%s2755_s11 + $0x28] sm:$0xff] %v1407_v12  ;;  %1410 = vst [vmem:[%s2755_s11 + $0x38] sm:$0xff] %v1409_v14  ;;  %v1413_v17 = vld [vmem:[%s2759_s18 + $0x58] sm:$0xff]  ;;  %v1415_v18 = vld [vmem:[%s2759_s18 + $0x68] sm:$0xff] }
 0x303   : >> { %1412 = vst [vmem:[%s2755_s11 + $0x48] sm:$0xff] %v1411_v15  ;;  %v1417_v19 = vld [vmem:[%s2759_s18 + $0x78] sm:$0xff]  ;;  %1414 = vst [vmem:[%s2755_s11 + $0x58] sm:$0xff] %v1413_v17  ;;  %v1419_v20 = vld [vmem:[%s2759_s18 + $0x88] sm:$0xff] }
 0x304   : >> { %1416 = vst [vmem:[%s2755_s11 + $0x68] sm:$0xff] %v1415_v18  ;;  %1418 = vst [vmem:[%s2755_s11 + $0x78] sm:$0xff] %v1417_v19  ;;  %v1421_v21 = vld [vmem:[%s2759_s18 + $0x98] sm:$0xff]  ;;  %v1423_v22 = vld [vmem:[%s2759_s18 + $0xa8] sm:$0xff]  ;;  %1367 = sbr.rel (!%p1364_p12) target bundleno = 760 (0x2f8), region = 254 }
 0x305   : >> { %1420 = vst [vmem:[%s2755_s11 + $0x88] sm:$0xff] %v1419_v20  ;;  %1422 = vst [vmem:[%s2755_s11 + $0x98] sm:$0xff] %v1421_v21  ;;  %v1425_v23 = vld [vmem:[%s2759_s18 + $0xb8] sm:$0xff]  ;;  %v1427_v24 = vld [vmem:[%s2759_s18 + $0xc8] sm:$0xff] }
 0x306   : >> { %1424 = vst [vmem:[%s2755_s11 + $0xa8] sm:$0xff] %v1423_v22  ;;  %v1429_v25 = vld [vmem:[%s2759_s18 + $0xd8] sm:$0xff]  ;;  %1426 = vst [vmem:[%s2755_s11 + $0xb8] sm:$0xff] %v1425_v23  ;;  %v1431_v26 = vld [vmem:[%s2759_s18 + $0xe8] sm:$0xff] }
 0x307   : >> { %1428 = vst [vmem:[%s2755_s11 + $0xc8] sm:$0xff] %v1427_v24  ;;  %1430 = vst [vmem:[%s2755_s11 + $0xd8] sm:$0xff] %v1429_v25  ;;  %v1433_v27 = vld [vmem:[%s2759_s18 + $0xf8] sm:$0xff]  ;;  %s3626_s18 = smov %s3365_s26 }
 0x308   : >> { %1432 = vst [vmem:[%s2755_s11 + $0xe8] sm:$0xff] %v1431_v26  ;;  %1434 = vst [vmem:[%s2755_s11 + $0xf8] sm:$0xff] %v1433_v27  ;;  %s3625_s11 = smov %s1441_s27 }
 0x309 PF: > { %s3406_s28 = sand.u32 15, %s3638_s14   ;;  %s2176_s25 = sshll.u32 %s3298_s29, 8 }
 0x30a   : > { %s3410_s0 = scalar_lea.vmem %s3127_s30, %s2176_s25 [#allocation2]   ;;  %s1448_s1 = scalar_lea.vmem %s3292_s23, %s2176_s25  }
 0x30b   : > { %p2140_p13 = scmp.le.s32.totalorder %s3406_s28, 0 }
 0x30c   : > { %s2769_s26 = smov (!%p2140_p13), %s1448_s1   ;;  %s2773_s22 = smov (!%p2140_p13), %s3410_s0  }
 0x30d   : > { %1953 = sbr.rel (%p2140_p13) target bundleno = 794 (0x31a), region = 259  ;;  %s2777_s27 = smov (!%p2140_p13), 0  }
 0x30e   : > { %s2781_s21 = smov (!%p2140_p13), 0  }
 0x312 LB: >> { %v1458_v28 = vld [vmem:[%s2775_s22] sm:$0xff]  ;;  %v1460_v29 = vld [vmem:[%s2775_s22 + $0x8] sm:$0xff]  ;;  %s1462_s30 = sadd.s32 1, %s2779_s27  ;;  %s1452_s21 = sadd.s32 1, %s2783_s21   ;;  %s2783_s21 = sphi %s2781_s21, %s1452_s21   ;;  %s2779_s27 = sphi %s2777_s27, %s2778_s27   ;;  %s2775_s22 = sphi %s2773_s22, %s1467_s22   ;;  %s2771_s26 = sphi %s2769_s26, %s1468_s26  }
 0x313   : >> { %1459 = vst [vmem:[%s2771_s26] sm:$0xff] %v1458_v28  ;;  %1461 = vst [vmem:[%s2771_s26 + $0x8] sm:$0xff] %v1460_v29  ;;  %p1463_p0 = scmp.ge.s32.totalorder %s1462_s30, %s3406_s28  ;;  %p1451_p1 = scmp.ge.s32.totalorder %s1452_s21, %s3406_s28 }
 0x315   : >> { %s3642_s30 = smov (%p1463_p0, %s1462_s30), 0  ;;  %1454 = sbr.rel (!%p1451_p1) target bundleno = 786 (0x312), region = 265 }
 0x316   : >> { %s2141_s14 = sshll.u32 %s3642_s30, 4  ;;  %s2778_s27 = smov %s3642_s30  }
 0x317   : >> { %s1467_s22 = scalar_lea.vmem %s3410_s0, %s2141_s14 [#allocation2]   ;;  %s1468_s26 = scalar_lea.vmem %s1448_s1, %s2141_s14  }
 0x31a PF: > { %1474 = sbr.rel (!%p2925_p4) target bundleno = 840 (0x348), region = 82  ;;  %s1476_s23 = ssub.s32 (%p2925_p4), 25, %s2933_s20 }
 0x31b   : > { %s2178_s29 = sshll.u32 (%p2925_p4), %s2913_s12, 7  ;;  %p1477_p2 = scmp.lt.s32.totalorder (%p2925_p4), %s1476_s23, 16 }
 0x31c   : > { %s3425_s19 = scalar_lea.vmem (%p2925_p4), %s3616_s8, %s2178_s29  }
 0x31f   : > { %s3644_s23 = smov (!%p1477_p2, %s1476_s23), 16 }
 0x320   : > { %s2144_s25 = sshll.u32 %s3644_s23, 7 }
 0x321   : > { %p2147_p3 = scmp.eq.s32.totalorder %s2144_s25, 0 }
 0x322   : > { %s3431_s0 = sshrl.u32 (!%p2147_p3), %s3644_s23, 4 }
 0x323   : > { %1485 = sbr.rel (%p2147_p3) target bundleno = 840 (0x348), region = 86  ;;  %p2148_p5 = scmp.le.s32.totalorder (!%p2147_p3), %s3431_s0, 0 }
 0x328   : > { %1967 = sbr.rel (%p2148_p5) target bundleno = 823 (0x337), region = 270  ;;  %s3628_s1 = smov (!%p2148_p5), %s3425_s19 }
 0x329   : > { %s3629_s28 = smov (!%p2148_p5), %s3103_s15  ;;  %s3440_s26 = smov (!%p2148_p5), 0  }
 0x32a   : > { %s3442_s22 = smov (!%p2148_p5), 0  }
 0x32d LB: >> { %v1578_v13 = vld [vmem:[%s2791_s28] sm:$0xff]  ;;  %v1580_v16 = vld [vmem:[%s2791_s28 + $0x8] sm:$0xff]  ;;  %v1582_v30 = vld [vmem:[%s2791_s28 + $0x10] sm:$0xff]  ;;  %s1610_s27 = sadd.s32 1, %s2795_s26  ;;  %s1572_s22 = sadd.s32 1, %s2799_s22   ;;  %s2799_s22 = sphi %s3442_s22, %s1572_s22   ;;  %s2795_s26 = sphi %s3440_s26, %s3630_s26   ;;  %s2791_s28 = sphi %s3629_s28, %s1615_s28   ;;  %s2787_s1 = sphi %s3628_s1, %s1616_s1  }
 0x32e   : >> { %1579 = vst [vmem:[%s2787_s1] sm:$0xff] %v1578_v13  ;;  %1581 = vst [vmem:[%s2787_s1 + $0x8] sm:$0xff] %v1580_v16  ;;  %v1584_v31 = vld [vmem:[%s2791_s28 + $0x18] sm:$0xff]  ;;  %v1586_v32 = vld [vmem:[%s2791_s28 + $0x20] sm:$0xff]  ;;  %p1611_p6 = scmp.ge.s32.totalorder %s1610_s27, %s3431_s0  ;;  %p1571_p7 = scmp.ge.s32.totalorder %s1572_s22, %s3431_s0 }
 0x32f   : >> { %1583 = vst [vmem:[%s2787_s1 + $0x10] sm:$0xff] %v1582_v30  ;;  %v1588_v33 = vld [vmem:[%s2791_s28 + $0x28] sm:$0xff]  ;;  %1585 = vst [vmem:[%s2787_s1 + $0x18] sm:$0xff] %v1584_v31  ;;  %v1590_v34 = vld [vmem:[%s2791_s28 + $0x30] sm:$0xff] }
 0x330   : >> { %1587 = vst [vmem:[%s2787_s1 + $0x20] sm:$0xff] %v1586_v32  ;;  %1589 = vst [vmem:[%s2787_s1 + $0x28] sm:$0xff] %v1588_v33  ;;  %v1592_v35 = vld [vmem:[%s2791_s28 + $0x38] sm:$0xff]  ;;  %v1594_v36 = vld [vmem:[%s2791_s28 + $0x40] sm:$0xff]  ;;  %s3646_s27 = smov (%p1611_p6, %s1610_s27), 0 }
 0x331   : >> { %1591 = vst [vmem:[%s2787_s1 + $0x30] sm:$0xff] %v1590_v34  ;;  %1593 = vst [vmem:[%s2787_s1 + $0x38] sm:$0xff] %v1592_v35  ;;  %v1596_v37 = vld [vmem:[%s2791_s28 + $0x48] sm:$0xff]  ;;  %v1598_v38 = vld [vmem:[%s2791_s28 + $0x50] sm:$0xff]  ;;  %s2149_s21 = sshll.u32 %s3646_s27, 7  ;;  %s3630_s26 = smov %s3646_s27 }
 0x332   : >> { %1595 = vst [vmem:[%s2787_s1 + $0x40] sm:$0xff] %v1594_v36  ;;  %v1600_v39 = vld [vmem:[%s2791_s28 + $0x58] sm:$0xff]  ;;  %1597 = vst [vmem:[%s2787_s1 + $0x48] sm:$0xff] %v1596_v37  ;;  %v1602_v40 = vld [vmem:[%s2791_s28 + $0x60] sm:$0xff]  ;;  %1574 = sbr.rel (!%p1571_p7) target bundleno = 813 (0x32d), region = 276 }
 0x333   : >> { %1599 = vst [vmem:[%s2787_s1 + $0x50] sm:$0xff] %v1598_v38  ;;  %1601 = vst [vmem:[%s2787_s1 + $0x58] sm:$0xff] %v1600_v39  ;;  %v1604_v41 = vld [vmem:[%s2791_s28 + $0x68] sm:$0xff]  ;;  %v1606_v42 = vld [vmem:[%s2791_s28 + $0x70] sm:$0xff] }
 0x334   : >> { %1603 = vst [vmem:[%s2787_s1 + $0x60] sm:$0xff] %v1602_v40  ;;  %1605 = vst [vmem:[%s2787_s1 + $0x68] sm:$0xff] %v1604_v41  ;;  %v1608_v43 = vld [vmem:[%s2791_s28 + $0x78] sm:$0xff]  ;;  %s1615_s28 = scalar_lea.vmem %s3103_s15, %s2149_s21 [#allocation3]  }
 0x335   : >> { %1607 = vst [vmem:[%s2787_s1 + $0x70] sm:$0xff] %v1606_v42  ;;  %1609 = vst [vmem:[%s2787_s1 + $0x78] sm:$0xff] %v1608_v43  ;;  %s1616_s1 = scalar_lea.vmem %s3425_s19, %s2149_s21  }
 0x337 PF: > { %s3500_s30 = sand.u32 15, %s3644_s23   ;;  %s2179_s14 = sshll.u32 %s3431_s0, 7 }
 0x338   : > { %s1621_s29 = scalar_lea.vmem %s3103_s15, %s2179_s14 [#allocation3]   ;;  %s1623_s11 = scalar_lea.vmem %s3425_s19, %s2179_s14  }
 0x339   : > { %p2154_p8 = scmp.le.s32.totalorder %s3500_s30, 0 }
 0x33a   : > { %s2801_s18 = smov (!%p2154_p8), %s1623_s11   ;;  %s2805_s25 = smov (!%p2154_p8), %s1621_s29  }
 0x33b   : > { %1981 = sbr.rel (%p2154_p8) target bundleno = 840 (0x348), region = 281  ;;  %s2809_s21 = smov (!%p2154_p8), 0  }
 0x33c   : > { %s2813_s27 = smov (!%p2154_p8), 0  }
 0x340 LB: >> { %v1633_v44 = vld [vmem:[%s2807_s25] sm:$0xff]  ;;  %s1635_s23 = sadd.s32 1, %s2811_s21  ;;  %s1627_s27 = sadd.s32 1, %s2815_s27   ;;  %s2815_s27 = sphi %s2813_s27, %s1627_s27   ;;  %s2811_s21 = sphi %s2809_s21, %s2810_s21   ;;  %s2807_s25 = sphi %s2805_s25, %s1640_s25   ;;  %s2803_s18 = sphi %s2801_s18, %s1641_s18  }
 0x341   : >> { %1634 = vst [vmem:[%s2803_s18] sm:$0xff] %v1633_v44  ;;  %p1636_p9 = scmp.ge.s32.totalorder %s1635_s23, %s3500_s30  ;;  %p1626_p10 = scmp.ge.s32.totalorder %s1627_s27, %s3500_s30 }
 0x343   : >> { %s3648_s23 = smov (%p1636_p9, %s1635_s23), 0  ;;  %1629 = sbr.rel (!%p1626_p10) target bundleno = 832 (0x340), region = 287 }
 0x344   : >> { %s2155_s15 = sshll.u32 %s3648_s23, 3  ;;  %s2810_s21 = smov %s3648_s23  }
 0x345   : >> { %s1640_s25 = scalar_lea.vmem %s1621_s29, %s2155_s15 [#allocation3]   ;;  %s1641_s18 = scalar_lea.vmem %s1623_s11, %s2155_s15  }
 0x348 PF: > { %1647 = sbr.rel (!%p2925_p4) target bundleno = 886 (0x376), region = 134  ;;  %s1649_s19 = ssub.s32 (%p2925_p4), 25, %s2933_s20 }
 0x349   : > { %s2181_s0 = sshll.u32 (%p2925_p4), %s2913_s12, 7  ;;  %p1650_p11 = scmp.lt.s32.totalorder (%p2925_p4), %s1649_s19, 16 }
 0x34a   : > { %s3515_s26 = scalar_lea.vmem (%p2925_p4), %s3617_s9, %s2181_s0  }
 0x34d   : > { %s3650_s19 = smov (!%p1650_p11, %s1649_s19), 16 }
 0x34e   : > { %s2158_s22 = sshll.u32 %s3650_s19, 7 }
 0x34f   : > { %p2161_p12 = scmp.eq.s32.totalorder %s2158_s22, 0 }
 0x350   : > { %s3521_s30 = sshrl.u32 (!%p2161_p12), %s3650_s19, 4 }
 0x351   : > { %1658 = sbr.rel (%p2161_p12) target bundleno = 886 (0x376), region = 138  ;;  %p2162_p4 = scmp.le.s32.totalorder (!%p2161_p12), %s3521_s30, 0 }
 0x356   : > { %1995 = sbr.rel (%p2162_p4) target bundleno = 869 (0x365), region = 292  ;;  %s3631_s12 = smov (!%p2162_p4), %s3515_s26 }
 0x357   : > { %s3632_s17 = smov (!%p2162_p4), %s3267_s24  ;;  %s3530_s20 = smov (!%p2162_p4), 0  }
 0x358   : > { %s3532_s14 = smov (!%p2162_p4), 0  }
 0x35b LB: >> { %v1751_v45 = vld [vmem:[%s2823_s17] sm:$0xff]  ;;  %v1753_v46 = vld [vmem:[%s2823_s17 + $0x8] sm:$0xff]  ;;  %v1755_v47 = vld [vmem:[%s2823_s17 + $0x10] sm:$0xff]  ;;  %s1783_s29 = sadd.s32 1, %s2827_s20  ;;  %s1745_s14 = sadd.s32 1, %s2831_s14   ;;  %s2831_s14 = sphi %s3532_s14, %s1745_s14   ;;  %s2827_s20 = sphi %s3530_s20, %s3633_s20   ;;  %s2823_s17 = sphi %s3632_s17, %s1788_s17   ;;  %s2819_s12 = sphi %s3631_s12, %s1789_s12  }
 0x35c   : >> { %1752 = vst [vmem:[%s2819_s12] sm:$0xff] %v1751_v45  ;;  %1754 = vst [vmem:[%s2819_s12 + $0x8] sm:$0xff] %v1753_v46  ;;  %v1757_v48 = vld [vmem:[%s2823_s17 + $0x18] sm:$0xff]  ;;  %v1759_v49 = vld [vmem:[%s2823_s17 + $0x20] sm:$0xff]  ;;  %p1784_p13 = scmp.ge.s32.totalorder %s1783_s29, %s3521_s30  ;;  %p1744_p0 = scmp.ge.s32.totalorder %s1745_s14, %s3521_s30 }
 0x35d   : >> { %1756 = vst [vmem:[%s2819_s12 + $0x10] sm:$0xff] %v1755_v47  ;;  %v1761_v50 = vld [vmem:[%s2823_s17 + $0x28] sm:$0xff]  ;;  %1758 = vst [vmem:[%s2819_s12 + $0x18] sm:$0xff] %v1757_v48  ;;  %v1763_v51 = vld [vmem:[%s2823_s17 + $0x30] sm:$0xff] }
 0x35e   : >> { %1760 = vst [vmem:[%s2819_s12 + $0x20] sm:$0xff] %v1759_v49  ;;  %1762 = vst [vmem:[%s2819_s12 + $0x28] sm:$0xff] %v1761_v50  ;;  %v1765_v52 = vld [vmem:[%s2823_s17 + $0x38] sm:$0xff]  ;;  %v1767_v53 = vld [vmem:[%s2823_s17 + $0x40] sm:$0xff]  ;;  %s3652_s29 = smov (%p1784_p13, %s1783_s29), 0 }
 0x35f   : >> { %1764 = vst [vmem:[%s2819_s12 + $0x30] sm:$0xff] %v1763_v51  ;;  %1766 = vst [vmem:[%s2819_s12 + $0x38] sm:$0xff] %v1765_v52  ;;  %v1769_v54 = vld [vmem:[%s2823_s17 + $0x48] sm:$0xff]  ;;  %v1771_v55 = vld [vmem:[%s2823_s17 + $0x50] sm:$0xff]  ;;  %s2163_s11 = sshll.u32 %s3652_s29, 7  ;;  %s3633_s20 = smov %s3652_s29 }
 0x360   : >> { %1768 = vst [vmem:[%s2819_s12 + $0x40] sm:$0xff] %v1767_v53  ;;  %v1773_v57 = vld [vmem:[%s2823_s17 + $0x58] sm:$0xff]  ;;  %1770 = vst [vmem:[%s2819_s12 + $0x48] sm:$0xff] %v1769_v54  ;;  %v1775_v59 = vld [vmem:[%s2823_s17 + $0x60] sm:$0xff]  ;;  %1747 = sbr.rel (!%p1744_p0) target bundleno = 859 (0x35b), region = 298 }
 0x361   : >> { %1772 = vst [vmem:[%s2819_s12 + $0x50] sm:$0xff] %v1771_v55  ;;  %1774 = vst [vmem:[%s2819_s12 + $0x58] sm:$0xff] %v1773_v57  ;;  %v1777_v60 = vld [vmem:[%s2823_s17 + $0x68] sm:$0xff]  ;;  %v1779_v61 = vld [vmem:[%s2823_s17 + $0x70] sm:$0xff] }
 0x362   : >> { %1776 = vst [vmem:[%s2819_s12 + $0x60] sm:$0xff] %v1775_v59  ;;  %1778 = vst [vmem:[%s2819_s12 + $0x68] sm:$0xff] %v1777_v60  ;;  %v1781_v62 = vld [vmem:[%s2823_s17 + $0x78] sm:$0xff]  ;;  %s1788_s17 = scalar_lea.vmem %s3267_s24, %s2163_s11 [#allocation4]  }
 0x363   : >> { %1780 = vst [vmem:[%s2819_s12 + $0x70] sm:$0xff] %v1779_v61  ;;  %1782 = vst [vmem:[%s2819_s12 + $0x78] sm:$0xff] %v1781_v62  ;;  %s1789_s12 = scalar_lea.vmem %s3515_s26, %s2163_s11  }
 0x365 PF: > { %s3590_s18 = sand.u32 15, %s3650_s19   ;;  %s2182_s25 = sshll.u32 %s3521_s30, 7 }
 0x366   : > { %s1794_s21 = scalar_lea.vmem %s3267_s24, %s2182_s25 [#allocation4]   ;;  %s1796_s27 = scalar_lea.vmem %s3515_s26, %s2182_s25  }
 0x367   : > { %p2168_p1 = scmp.le.s32.totalorder %s3590_s18, 0 }
 0x368   : > { %s2833_s23 = smov (!%p2168_p1), %s1796_s27   ;;  %s2837_s15 = smov (!%p2168_p1), %s1794_s21  }
 0x369   : > { %2009 = sbr.rel (%p2168_p1) target bundleno = 886 (0x376), region = 303  ;;  %s2841_s0 = smov (!%p2168_p1), 0  }
 0x36a   : > { %s2845_s1 = smov (!%p2168_p1), 0  }
 0x36e LB: >> { %v1806_v63 = vld [vmem:[%s2839_s15] sm:$0xff]  ;;  %s1808_s19 = sadd.s32 1, %s2843_s0  ;;  %s1800_s1 = sadd.s32 1, %s2847_s1   ;;  %s2847_s1 = sphi %s2845_s1, %s1800_s1   ;;  %s2843_s0 = sphi %s2841_s0, %s2842_s0   ;;  %s2839_s15 = sphi %s2837_s15, %s1813_s15   ;;  %s2835_s23 = sphi %s2833_s23, %s1814_s23  }
 0x36f   : >> { %1807 = vst [vmem:[%s2835_s23] sm:$0xff] %v1806_v63  ;;  %p1809_p2 = scmp.ge.s32.totalorder %s1808_s19, %s3590_s18  ;;  %p1799_p3 = scmp.ge.s32.totalorder %s1800_s1, %s3590_s18 }
 0x371   : >> { %s3654_s19 = smov (%p1809_p2, %s1808_s19), 0  ;;  %1802 = sbr.rel (!%p1799_p3) target bundleno = 878 (0x36e), region = 309 }
 0x372   : >> { %s2169_s24 = sshll.u32 %s3654_s19, 3  ;;  %s2842_s0 = smov %s3654_s19  }
 0x373   : >> { %s1813_s15 = scalar_lea.vmem %s1794_s21, %s2169_s24 [#allocation4]   ;;  %s1814_s23 = scalar_lea.vmem %s1796_s27, %s2169_s24  }
 0x376 PF: > { %p17_p5 = scmp.ge.s32.totalorder %s2915_s13, 4   ;;  %s3634_s30 = smov %s2747_s10 }
 0x377   : > { %s3635_s10 = smov %s2923_s16  ;;  %s3636_s11 = smov %s2915_s13 }
 0x378   :  { %19 = sbr.rel (!%p17_p5) target bundleno = 5 (0x5), region = 320 }

</bundles_post_ra>
